<compile_context>
chip_gen: v5e
topology: v5e:2x2
jax: 0.10.0
libtpu: 0.0.40
codegen_flags: <defaults>
</compile_context>

<pallas_src>
import functools
import math

import jax
import jax.numpy as jnp
from jax.experimental import pallas as pl
from jax.experimental.pallas import tpu as pltpu


def _layernorm(x, a, b, eps):
    # torch LayerNorm-in-reference: mean over last dim, unbiased std (ddof=1),
    # and division by (std + eps)  (NOT sqrt(var + eps)).
    mean = jnp.mean(x, axis=-1, keepdims=True)
    var = jnp.sum((x - mean) ** 2, axis=-1, keepdims=True) * (1.0 / (x.shape[-1] - 1))
    inv = pl.reciprocal(jnp.sqrt(var) + eps, approx=True)   # EUP slot, ~free
    return b + a * (x - mean) * inv


def encoder_layer_kernel(x_ref,
                         a1_ref, b1_ref,
                         wq_ref, bq_ref, wk_ref, bk_ref, wv_ref, bv_ref,
                         wo_ref, bo_ref,
                         a2_ref, b2_ref,
                         w1_ref, b1f_ref, w2_ref, b2f_ref,
                         o_ref, *, h, eps, compute_dtype):
    Bb, S, D = x_ref.shape
    dk = D // h
    N = Bb * S
    inv_sqrt_dk = 1.0 / math.sqrt(dk)

    x = x_ref[...].reshape(N, D)                       # flat (Bb*S, D) row slab, f32

    # ---------------- sublayer 0: x + MHA(LN1(x)) ----------------
    xn = _layernorm(x, a1_ref[...], b1_ref[...], eps)
    xn_c = xn.astype(compute_dtype)

    # Per-head projections from pre-split (h, D, dk) weights: leading-axis
    # indexing of the weight ref only -- no lane-axis slicing of activations.
    q_l, k_l, v_l = [], [], []
    for hd in range(h):                                # static unroll, h is small
        qh = jnp.dot(xn_c, wq_ref[hd], preferred_element_type=jnp.float32) + bq_ref[hd]
        kh = jnp.dot(xn_c, wk_ref[hd], preferred_element_type=jnp.float32) + bk_ref[hd]
        vh = jnp.dot(xn_c, wv_ref[hd], preferred_element_type=jnp.float32) + bv_ref[hd]
        q_l.append((qh * inv_sqrt_dk).astype(compute_dtype).reshape(Bb, S, dk))
        k_l.append(kh.astype(compute_dtype).reshape(Bb, S, dk))
        v_l.append(vh.astype(compute_dtype).reshape(Bb, S, dk))
    # Head-major stacking along a leading (non-tiled) axis -> (h*Bb, S, dk).
    q_all = jnp.concatenate(q_l, axis=0)
    k_all = jnp.concatenate(k_l, axis=0)
    v_all = jnp.concatenate(v_l, axis=0)

    # Single batched attention contraction over all (head, batch) pairs.
    # The reference forward is called with a non-None mask, which get_attn then
    # ignores -> plain unmasked softmax attention.
    scores = jnp.einsum('zqd,zkd->zqk', q_all, k_all,
                        preferred_element_type=jnp.float32)       # (h*Bb, S, S)
    scores = scores - jnp.max(scores, axis=-1, keepdims=True)
    e = jnp.exp(scores)
    p = e * pl.reciprocal(jnp.sum(e, axis=-1, keepdims=True), approx=True)
    attn = jnp.einsum('zqk,zkd->zqd', p.astype(compute_dtype), v_all,
                      preferred_element_type=jnp.float32)         # (h*Bb, S, dk)

    # Output projection: the head concatenate is folded into a sum of per-head
    # matmuls against the pre-split (h, dk, D) Wo^T blocks (no lane concat).
    attn_heads = attn.reshape(h, N, dk)
    mha = jnp.zeros((N, D), jnp.float32)
    for hd in range(h):
        mha = mha + jnp.dot(attn_heads[hd].astype(compute_dtype), wo_ref[hd],
                            preferred_element_type=jnp.float32)
    mha = mha + bo_ref[...]
    # TODO(synk): dropout layers are identity (inference mode).
    x = x + mha

    # ---------------- sublayer 1: x + FFN(LN2(x)) ----------------
    xn2 = _layernorm(x, a2_ref[...], b2_ref[...], eps)
    hid = jnp.dot(xn2.astype(compute_dtype), w1_ref[...],
                  preferred_element_type=jnp.float32) + b1f_ref[...]
    hid = jnp.maximum(hid, 0.0)
    ffn = jnp.dot(hid.astype(compute_dtype), w2_ref[...],
                  preferred_element_type=jnp.float32) + b2f_ref[...]
    o_ref[...] = (x + ffn).reshape(Bb, S, D)


def encoder_layer(x, params, *, h, eps=1e-6, block_b=None,
                  compute_dtype=jnp.bfloat16):
    """Fused EncoderLayer forward.

    `params` use torch.nn layouts: wX is (out_features, in_features) applied as
    y = x @ wX.T + bX; biases / LN params are (1, features).
    """
    B, S, D = x.shape
    assert D % h == 0
    dk = D // h

    if block_b is None:
        # Fold batch elements per grid step, but keep >= 2 grid steps when
        # possible so v7x's two TensorCores both get work (no-op on v5e/v6e).
        if B >= 2 and B % 2 == 0:
            block_b = B // 2
        else:
            block_b = B
    assert B % block_b == 0
    grid = (B // block_b,)

    cdt = compute_dtype
    f32 = jnp.float32

    # Pre-transpose / pre-split weights ONCE in the wrapper so the kernel never
    # transposes or lane-slices; matmul operands are cast to the MXU dtype.
    wq = jnp.transpose(params["wq"].reshape(h, dk, D), (0, 2, 1)).astype(cdt)  # (h, D, dk)
    wk = jnp.transpose(params["wk"].reshape(h, dk, D), (0, 2, 1)).astype(cdt)
    wv = jnp.transpose(params["wv"].reshape(h, dk, D), (0, 2, 1)).astype(cdt)
    wo = params["wo"].T.reshape(h, dk, D).astype(cdt)                          # (h, dk, D)
    w1 = params["w1"].T.astype(cdt)                                            # (D, FF)
    w2 = params["w2"].T.astype(cdt)                                            # (FF, D)
    bq = params["bq"].reshape(h, 1, dk).astype(f32)
    bk = params["bk"].reshape(h, 1, dk).astype(f32)
    bv = params["bv"].reshape(h, 1, dk).astype(f32)

    ordered = [
        params["a1"].astype(f32), params["b1"].astype(f32),
        wq, bq, wk, bk, wv, bv,
        wo, params["bo"].astype(f32),
        params["a2"].astype(f32), params["b2"].astype(f32),
        w1, params["b1f"].astype(f32), w2, params["b2f"].astype(f32),
    ]

    def const_spec(arr):
        nd = arr.ndim
        return pl.BlockSpec(arr.shape, lambda i, _nd=nd: (0,) * _nd)

    # TODO(synk): at production sizes on v7x (64 MiB VMEM), single-buffer these
    # loop-invariant weights (pipeline_mode=pl.Buffered(1)) and tile the
    # sequence (online-softmax attention / K-chunked FFN).

    kernel = functools.partial(encoder_layer_kernel, h=h, eps=eps,
                               compute_dtype=cdt)
    return pl.pallas_call(
        kernel,
        out_shape=jax.ShapeDtypeStruct((B, S, D), jnp.float32),
        grid=grid,
        in_specs=[pl.BlockSpec((block_b, S, D), lambda i: (i, 0, 0))]
                 + [const_spec(a) for a in ordered],
        out_specs=pl.BlockSpec((block_b, S, D), lambda i: (i, 0, 0)),
        compiler_params=pltpu.CompilerParams(
            dimension_semantics=("parallel",),
            vmem_limit_bytes=64 * 1024 * 1024),
    )(x, *ordered)


# ------------------------- pure-JAX reference -------------------------
def ref_encoder_layer(x, p, *, h, eps=1e-6):
    def ln(t, a, b):
        mean = t.mean(-1, keepdims=True)
        std = jnp.sqrt(((t - mean) ** 2).sum(-1, keepdims=True) / (t.shape[-1] - 1))
        return b + a * (t - mean) / (std + eps)

    B, S, D = x.shape
    dk = D // h
    xn = ln(x, p["a1"], p["b1"])
    q = xn @ p["wq"].T + p["bq"]
    k = xn @ p["wk"].T + p["bk"]
    v = xn @ p["wv"].T + p["bv"]
    q = q.reshape(B, S, h, dk).transpose(0, 2, 1, 3)
    k = k.reshape(B, S, h, dk).transpose(0, 2, 1, 3)
    v = v.reshape(B, S, h, dk).transpose(0, 2, 1, 3)
    scores = (q @ k.transpose(0, 1, 3, 2)) / math.sqrt(dk)
    sm = jax.nn.softmax(scores, axis=-1)
    out = (sm @ v).transpose(0, 2, 1, 3).reshape(B, S, D)
    x = x + (out @ p["wo"].T + p["bo"])
    xn2 = ln(x, p["a2"], p["b2"])
    ffn = jnp.maximum(xn2 @ p["w1"].T + p["b1f"], 0.0) @ p["w2"].T + p["b2f"]
    return x + ffn


if __name__ == "__main__":
    # Small shapes consistent with the module: d_model must equal h * 64.
    B, S, H, FF = 4, 16, 2, 256
    D = H * 64                                   # 128 -> lane-dense blocks

    key = jax.random.PRNGKey(0)
    keys = jax.random.split(key, 16)

    def rnd(k, shape, scale=0.05):
        return jax.random.normal(k, shape, dtype=jnp.float32) * scale

    params = {
        "a1": jnp.ones((1, D), jnp.float32),
        "b1": jnp.zeros((1, D), jnp.float32),
        "wq": rnd(keys[0], (D, D)),  "bq": rnd(keys[1], (1, D)),
        "wk": rnd(keys[2], (D, D)),  "bk": rnd(keys[3], (1, D)),
        "wv": rnd(keys[4], (D, D)),  "bv": rnd(keys[5], (1, D)),
        "wo": rnd(keys[6], (D, D)),  "bo": rnd(keys[7], (1, D)),
        "a2": jnp.ones((1, D), jnp.float32),
        "b2": jnp.zeros((1, D), jnp.float32),
        "w1": rnd(keys[8], (FF, D)), "b1f": rnd(keys[9], (1, FF)),
        "w2": rnd(keys[10], (D, FF)), "b2f": rnd(keys[11], (1, D)),
    }
    x = jax.random.normal(keys[12], (B, S, D), dtype=jnp.float32)
    # The PyTorch forward receives a non-None mask, which get_attn ignores, so
    # the mask never enters the computation.

    ref = ref_encoder_layer(x, params, h=H)

    # Default (performance) path: bf16 MXU operands, f32 accumulation.
    out = encoder_layer(x, params, h=H)
    out = jax.block_until_ready(out)
    assert out.shape == (B, S, D)
    assert jnp.allclose(out, ref, atol=5e-2, rtol=5e-2), "bf16 kernel mismatch vs reference"

    # f32-operand path for a tighter numerical check (only approx-reciprocal slack).
    out_f32 = encoder_layer(x, params, h=H, compute_dtype=jnp.float32)
    out_f32 = jax.block_until_ready(out_f32)
    assert jnp.allclose(out_f32, ref, atol=1e-2, rtol=1e-2), "f32 kernel mismatch vs reference"

    print("KERNEL_OK")
</pallas_src>

<mosaic_0001>
module attributes {stable_mosaic.version = 11 : i64} {
  func.func @encoder_layer_kernel(%arg0: i32, %arg1: memref<2x16x128xf32, #tpu.memory_space<vmem>>, %arg2: memref<1x128xf32, #tpu.memory_space<vmem>>, %arg3: memref<1x128xf32, #tpu.memory_space<vmem>>, %arg4: memref<2x128x64xbf16, #tpu.memory_space<vmem>>, %arg5: memref<2x1x64xf32, #tpu.memory_space<vmem>>, %arg6: memref<2x128x64xbf16, #tpu.memory_space<vmem>>, %arg7: memref<2x1x64xf32, #tpu.memory_space<vmem>>, %arg8: memref<2x128x64xbf16, #tpu.memory_space<vmem>>, %arg9: memref<2x1x64xf32, #tpu.memory_space<vmem>>, %arg10: memref<2x64x128xbf16, #tpu.memory_space<vmem>>, %arg11: memref<1x128xf32, #tpu.memory_space<vmem>>, %arg12: memref<1x128xf32, #tpu.memory_space<vmem>>, %arg13: memref<1x128xf32, #tpu.memory_space<vmem>>, %arg14: memref<128x256xbf16, #tpu.memory_space<vmem>>, %arg15: memref<1x256xf32, #tpu.memory_space<vmem>>, %arg16: memref<256x128xbf16, #tpu.memory_space<vmem>>, %arg17: memref<1x128xf32, #tpu.memory_space<vmem>>, %arg18: memref<2x16x128xf32, #tpu.memory_space<vmem>>) attributes {dimension_semantics = [#tpu.dimension_semantics<parallel>], iteration_bounds = array<i64: 2>, scalar_prefetch = 0 : i64, scratch_operands = 0 : i64, tpu.core_type = #tpu.core_type<tc>, window_params = [{transform_indices = @transform_0, window_bounds = array<i64: 2, 16, 128>}, {pipeline_mode = #tpu.pipeline_mode<synchronous>, transform_indices = @transform_1, window_bounds = array<i64: 1, 128>}, {pipeline_mode = #tpu.pipeline_mode<synchronous>, transform_indices = @transform_2, window_bounds = array<i64: 1, 128>}, {pipeline_mode = #tpu.pipeline_mode<synchronous>, transform_indices = @transform_3, window_bounds = array<i64: 2, 128, 64>}, {pipeline_mode = #tpu.pipeline_mode<synchronous>, transform_indices = @transform_4, window_bounds = array<i64: 2, 1, 64>}, {pipeline_mode = #tpu.pipeline_mode<synchronous>, transform_indices = @transform_5, window_bounds = array<i64: 2, 128, 64>}, {pipeline_mode = #tpu.pipeline_mode<synchronous>, transform_indices = @transform_6, window_bounds = array<i64: 2, 1, 64>}, {pipeline_mode = #tpu.pipeline_mode<synchronous>, transform_indices = @transform_7, window_bounds = array<i64: 2, 128, 64>}, {pipeline_mode = #tpu.pipeline_mode<synchronous>, transform_indices = @transform_8, window_bounds = array<i64: 2, 1, 64>}, {pipeline_mode = #tpu.pipeline_mode<synchronous>, transform_indices = @transform_9, window_bounds = array<i64: 2, 64, 128>}, {pipeline_mode = #tpu.pipeline_mode<synchronous>, transform_indices = @transform_10, window_bounds = array<i64: 1, 128>}, {pipeline_mode = #tpu.pipeline_mode<synchronous>, transform_indices = @transform_11, window_bounds = array<i64: 1, 128>}, {pipeline_mode = #tpu.pipeline_mode<synchronous>, transform_indices = @transform_12, window_bounds = array<i64: 1, 128>}, {pipeline_mode = #tpu.pipeline_mode<synchronous>, transform_indices = @transform_13, window_bounds = array<i64: 128, 256>}, {pipeline_mode = #tpu.pipeline_mode<synchronous>, transform_indices = @transform_14, window_bounds = array<i64: 1, 256>}, {pipeline_mode = #tpu.pipeline_mode<synchronous>, transform_indices = @transform_15, window_bounds = array<i64: 256, 128>}, {pipeline_mode = #tpu.pipeline_mode<synchronous>, transform_indices = @transform_16, window_bounds = array<i64: 1, 128>}, {transform_indices = @transform_17, window_bounds = array<i64: 2, 16, 128>}]} {
    %c0 = arith.constant 0 : index
    %c0_0 = arith.constant 0 : index
    %c0_1 = arith.constant 0 : index
    %0 = vector.load %arg1[%c0, %c0_0, %c0_1] : memref<2x16x128xf32, #tpu.memory_space<vmem>>, vector<2x16x128xf32>
    %1 = vector.shape_cast %0 : vector<2x16x128xf32> to vector<32x128xf32>
    %c0_2 = arith.constant 0 : index
    %c0_3 = arith.constant 0 : index
    %2 = vector.load %arg2[%c0_2, %c0_3] : memref<1x128xf32, #tpu.memory_space<vmem>>, vector<1x128xf32>
    %c0_4 = arith.constant 0 : index
    %c0_5 = arith.constant 0 : index
    %3 = vector.load %arg3[%c0_4, %c0_5] : memref<1x128xf32, #tpu.memory_space<vmem>>, vector<1x128xf32>
    %cst = arith.constant dense<0.000000e+00> : vector<32xf32>
    %4 = vector.multi_reduction <add>, %1, %cst [1] : vector<32x128xf32> to vector<32xf32>
    %5 = vector.shape_cast %4 : vector<32xf32> to vector<32x1xf32>
    %cst_6 = arith.constant 1.280000e+02 : f32
    %6 = vector.broadcast %cst_6 : f32 to vector<32x1xf32>
    %7 = arith.divf %5, %6 : vector<32x1xf32>
    %8 = vector.broadcast %7 : vector<32x1xf32> to vector<32x128xf32>
    %9 = arith.subf %1, %8 : vector<32x128xf32>
    %10 = arith.mulf %9, %9 : vector<32x128xf32>
    %cst_7 = arith.constant dense<0.000000e+00> : vector<32xf32>
    %11 = vector.multi_reduction <add>, %10, %cst_7 [1] : vector<32x128xf32> to vector<32xf32>
    %12 = vector.shape_cast %11 : vector<32xf32> to vector<32x1xf32>
    %cst_8 = arith.constant 0.00787401571 : f32
    %13 = vector.broadcast %cst_8 : f32 to vector<32x1xf32>
    %14 = arith.mulf %12, %13 : vector<32x1xf32>
    %15 = math.sqrt %14 : vector<32x1xf32>
    %cst_9 = arith.constant 9.99999997E-7 : f32
    %16 = vector.broadcast %cst_9 : f32 to vector<32x1xf32>
    %17 = arith.addf %15, %16 : vector<32x1xf32>
    %18 = tpu.reciprocal %17 {approx = true} : vector<32x1xf32> -> vector<32x1xf32>
    %19 = vector.broadcast %7 : vector<32x1xf32> to vector<32x128xf32>
    %20 = arith.subf %1, %19 : vector<32x128xf32>
    %21 = vector.broadcast %2 : vector<1x128xf32> to vector<32x128xf32>
    %22 = arith.mulf %21, %20 : vector<32x128xf32>
    %23 = vector.broadcast %18 : vector<32x1xf32> to vector<32x128xf32>
    %24 = arith.mulf %22, %23 : vector<32x128xf32>
    %25 = vector.broadcast %3 : vector<1x128xf32> to vector<32x128xf32>
    %26 = arith.addf %25, %24 : vector<32x128xf32>
    %27 = arith.truncf %26 : vector<32x128xf32> to vector<32x128xbf16>
    %c0_10 = arith.constant 0 : index
    %c0_11 = arith.constant 0 : index
    %c0_12 = arith.constant 0 : index
    %28 = vector.load %arg4[%c0_10, %c0_11, %c0_12] : memref<2x128x64xbf16, #tpu.memory_space<vmem>>, vector<1x128x64xbf16>
    %29 = vector.shape_cast %28 : vector<1x128x64xbf16> to vector<128x64xbf16>
    %cst_13 = arith.constant dense<0.000000e+00> : vector<32x64xf32>
    %30 = tpu.matmul %27, %29, %cst_13 {dimension_numbers = #tpu.dot_dimension_numbers<[1], [0], [0], [1], [0, 0, 1, 1], [], []>} : vector<32x128xbf16>, vector<128x64xbf16>, vector<32x64xf32> -> vector<32x64xf32>
    %c0_14 = arith.constant 0 : index
    %c0_15 = arith.constant 0 : index
    %c0_16 = arith.constant 0 : index
    %31 = vector.load %arg5[%c0_14, %c0_15, %c0_16] : memref<2x1x64xf32, #tpu.memory_space<vmem>>, vector<1x1x64xf32>
    %32 = vector.shape_cast %31 : vector<1x1x64xf32> to vector<1x64xf32>
    %33 = vector.broadcast %32 : vector<1x64xf32> to vector<32x64xf32>
    %34 = arith.addf %30, %33 : vector<32x64xf32>
    %c0_17 = arith.constant 0 : index
    %c0_18 = arith.constant 0 : index
    %c0_19 = arith.constant 0 : index
    %35 = vector.load %arg6[%c0_17, %c0_18, %c0_19] : memref<2x128x64xbf16, #tpu.memory_space<vmem>>, vector<1x128x64xbf16>
    %36 = vector.shape_cast %35 : vector<1x128x64xbf16> to vector<128x64xbf16>
    %cst_20 = arith.constant dense<0.000000e+00> : vector<32x64xf32>
    %37 = tpu.matmul %27, %36, %cst_20 {dimension_numbers = #tpu.dot_dimension_numbers<[1], [0], [0], [1], [0, 0, 1, 1], [], []>} : vector<32x128xbf16>, vector<128x64xbf16>, vector<32x64xf32> -> vector<32x64xf32>
    %c0_21 = arith.constant 0 : index
    %c0_22 = arith.constant 0 : index
    %c0_23 = arith.constant 0 : index
    %38 = vector.load %arg7[%c0_21, %c0_22, %c0_23] : memref<2x1x64xf32, #tpu.memory_space<vmem>>, vector<1x1x64xf32>
    %39 = vector.shape_cast %38 : vector<1x1x64xf32> to vector<1x64xf32>
    %40 = vector.broadcast %39 : vector<1x64xf32> to vector<32x64xf32>
    %41 = arith.addf %37, %40 : vector<32x64xf32>
    %c0_24 = arith.constant 0 : index
    %c0_25 = arith.constant 0 : index
    %c0_26 = arith.constant 0 : index
    %42 = vector.load %arg8[%c0_24, %c0_25, %c0_26] : memref<2x128x64xbf16, #tpu.memory_space<vmem>>, vector<1x128x64xbf16>
    %43 = vector.shape_cast %42 : vector<1x128x64xbf16> to vector<128x64xbf16>
    %cst_27 = arith.constant dense<0.000000e+00> : vector<32x64xf32>
    %44 = tpu.matmul %27, %43, %cst_27 {dimension_numbers = #tpu.dot_dimension_numbers<[1], [0], [0], [1], [0, 0, 1, 1], [], []>} : vector<32x128xbf16>, vector<128x64xbf16>, vector<32x64xf32> -> vector<32x64xf32>
    %c0_28 = arith.constant 0 : index
    %c0_29 = arith.constant 0 : index
    %c0_30 = arith.constant 0 : index
    %45 = vector.load %arg9[%c0_28, %c0_29, %c0_30] : memref<2x1x64xf32, #tpu.memory_space<vmem>>, vector<1x1x64xf32>
    %46 = vector.shape_cast %45 : vector<1x1x64xf32> to vector<1x64xf32>
    %47 = vector.broadcast %46 : vector<1x64xf32> to vector<32x64xf32>
    %48 = arith.addf %44, %47 : vector<32x64xf32>
    %cst_31 = arith.constant 1.250000e-01 : f32
    %49 = vector.broadcast %cst_31 : f32 to vector<32x64xf32>
    %50 = arith.mulf %34, %49 : vector<32x64xf32>
    %51 = arith.truncf %50 : vector<32x64xf32> to vector<32x64xbf16>
    %52 = vector.shape_cast %51 : vector<32x64xbf16> to vector<2x16x64xbf16>
    %53 = arith.truncf %41 : vector<32x64xf32> to vector<32x64xbf16>
    %54 = vector.shape_cast %53 : vector<32x64xbf16> to vector<2x16x64xbf16>
    %55 = arith.truncf %48 : vector<32x64xf32> to vector<32x64xbf16>
    %56 = vector.shape_cast %55 : vector<32x64xbf16> to vector<2x16x64xbf16>
    %c1 = arith.constant 1 : index
    %c0_32 = arith.constant 0 : index
    %c0_33 = arith.constant 0 : index
    %57 = vector.load %arg4[%c1, %c0_32, %c0_33] : memref<2x128x64xbf16, #tpu.memory_space<vmem>>, vector<1x128x64xbf16>
    %58 = vector.shape_cast %57 : vector<1x128x64xbf16> to vector<128x64xbf16>
    %cst_34 = arith.constant dense<0.000000e+00> : vector<32x64xf32>
    %59 = tpu.matmul %27, %58, %cst_34 {dimension_numbers = #tpu.dot_dimension_numbers<[1], [0], [0], [1], [0, 0, 1, 1], [], []>} : vector<32x128xbf16>, vector<128x64xbf16>, vector<32x64xf32> -> vector<32x64xf32>
    %c1_35 = arith.constant 1 : index
    %c0_36 = arith.constant 0 : index
    %c0_37 = arith.constant 0 : index
    %60 = vector.load %arg5[%c1_35, %c0_36, %c0_37] : memref<2x1x64xf32, #tpu.memory_space<vmem>>, vector<1x1x64xf32>
    %61 = vector.shape_cast %60 : vector<1x1x64xf32> to vector<1x64xf32>
    %62 = vector.broadcast %61 : vector<1x64xf32> to vector<32x64xf32>
    %63 = arith.addf %59, %62 : vector<32x64xf32>
    %c1_38 = arith.constant 1 : index
    %c0_39 = arith.constant 0 : index
    %c0_40 = arith.constant 0 : index
    %64 = vector.load %arg6[%c1_38, %c0_39, %c0_40] : memref<2x128x64xbf16, #tpu.memory_space<vmem>>, vector<1x128x64xbf16>
    %65 = vector.shape_cast %64 : vector<1x128x64xbf16> to vector<128x64xbf16>
    %cst_41 = arith.constant dense<0.000000e+00> : vector<32x64xf32>
    %66 = tpu.matmul %27, %65, %cst_41 {dimension_numbers = #tpu.dot_dimension_numbers<[1], [0], [0], [1], [0, 0, 1, 1], [], []>} : vector<32x128xbf16>, vector<128x64xbf16>, vector<32x64xf32> -> vector<32x64xf32>
    %c1_42 = arith.constant 1 : index
    %c0_43 = arith.constant 0 : index
    %c0_44 = arith.constant 0 : index
    %67 = vector.load %arg7[%c1_42, %c0_43, %c0_44] : memref<2x1x64xf32, #tpu.memory_space<vmem>>, vector<1x1x64xf32>
    %68 = vector.shape_cast %67 : vector<1x1x64xf32> to vector<1x64xf32>
    %69 = vector.broadcast %68 : vector<1x64xf32> to vector<32x64xf32>
    %70 = arith.addf %66, %69 : vector<32x64xf32>
    %c1_45 = arith.constant 1 : index
    %c0_46 = arith.constant 0 : index
    %c0_47 = arith.constant 0 : index
    %71 = vector.load %arg8[%c1_45, %c0_46, %c0_47] : memref<2x128x64xbf16, #tpu.memory_space<vmem>>, vector<1x128x64xbf16>
    %72 = vector.shape_cast %71 : vector<1x128x64xbf16> to vector<128x64xbf16>
    %cst_48 = arith.constant dense<0.000000e+00> : vector<32x64xf32>
    %73 = tpu.matmul %27, %72, %cst_48 {dimension_numbers = #tpu.dot_dimension_numbers<[1], [0], [0], [1], [0, 0, 1, 1], [], []>} : vector<32x128xbf16>, vector<128x64xbf16>, vector<32x64xf32> -> vector<32x64xf32>
    %c1_49 = arith.constant 1 : index
    %c0_50 = arith.constant 0 : index
    %c0_51 = arith.constant 0 : index
    %74 = vector.load %arg9[%c1_49, %c0_50, %c0_51] : memref<2x1x64xf32, #tpu.memory_space<vmem>>, vector<1x1x64xf32>
    %75 = vector.shape_cast %74 : vector<1x1x64xf32> to vector<1x64xf32>
    %76 = vector.broadcast %75 : vector<1x64xf32> to vector<32x64xf32>
    %77 = arith.addf %73, %76 : vector<32x64xf32>
    %cst_52 = arith.constant 1.250000e-01 : f32
    %78 = vector.broadcast %cst_52 : f32 to vector<32x64xf32>
    %79 = arith.mulf %63, %78 : vector<32x64xf32>
    %80 = arith.truncf %79 : vector<32x64xf32> to vector<32x64xbf16>
    %81 = vector.shape_cast %80 : vector<32x64xbf16> to vector<2x16x64xbf16>
    %82 = arith.truncf %70 : vector<32x64xf32> to vector<32x64xbf16>
    %83 = vector.shape_cast %82 : vector<32x64xbf16> to vector<2x16x64xbf16>
    %84 = arith.truncf %77 : vector<32x64xf32> to vector<32x64xbf16>
    %85 = vector.shape_cast %84 : vector<32x64xbf16> to vector<2x16x64xbf16>
    %86 = tpu.concatenate %52, %81 in 0 : vector<2x16x64xbf16>, vector<2x16x64xbf16> -> vector<4x16x64xbf16>
    %87 = tpu.concatenate %54, %83 in 0 : vector<2x16x64xbf16>, vector<2x16x64xbf16> -> vector<4x16x64xbf16>
    %88 = tpu.concatenate %56, %85 in 0 : vector<2x16x64xbf16>, vector<2x16x64xbf16> -> vector<4x16x64xbf16>
    "tpu.trace_start"() <{level = 10 : i32, message = "zqd,zkd->zqk"}> : () -> ()
    %cst_53 = arith.constant dense<0.000000e+00> : vector<4x16x16xf32>
    %89 = tpu.matmul %86, %87, %cst_53 {dimension_numbers = #tpu.dot_dimension_numbers<[2], [2], [1], [1], [0, 0, 0, 1, 1, 1], [0], [0]>} : vector<4x16x64xbf16>, vector<4x16x64xbf16>, vector<4x16x16xf32> -> vector<4x16x16xf32>
    "tpu.trace_stop"() : () -> ()
    %cst_54 = arith.constant dense<0xFF800000> : vector<4x16xf32>
    %90 = vector.multi_reduction <maximumf>, %89, %cst_54 [2] : vector<4x16x16xf32> to vector<4x16xf32>
    %91 = vector.shape_cast %90 : vector<4x16xf32> to vector<4x16x1xf32>
    %92 = vector.broadcast %91 : vector<4x16x1xf32> to vector<4x16x16xf32>
    %93 = arith.subf %89, %92 : vector<4x16x16xf32>
    %94 = math.exp %93 : vector<4x16x16xf32>
    %cst_55 = arith.constant dense<0.000000e+00> : vector<4x16xf32>
    %95 = vector.multi_reduction <add>, %94, %cst_55 [2] : vector<4x16x16xf32> to vector<4x16xf32>
    %96 = vector.shape_cast %95 : vector<4x16xf32> to vector<4x16x1xf32>
    %97 = tpu.reciprocal %96 {approx = true} : vector<4x16x1xf32> -> vector<4x16x1xf32>
    %98 = vector.broadcast %97 : vector<4x16x1xf32> to vector<4x16x16xf32>
    %99 = arith.mulf %94, %98 : vector<4x16x16xf32>
    %100 = arith.truncf %99 : vector<4x16x16xf32> to vector<4x16x16xbf16>
    "tpu.trace_start"() <{level = 10 : i32, message = "zqk,zkd->zqd"}> : () -> ()
    %cst_56 = arith.constant dense<0.000000e+00> : vector<4x16x64xf32>
    %101 = tpu.matmul %100, %88, %cst_56 {dimension_numbers = #tpu.dot_dimension_numbers<[2], [1], [1], [2], [0, 0, 0, 1, 1, 2], [0], [0]>} : vector<4x16x16xbf16>, vector<4x16x64xbf16>, vector<4x16x64xf32> -> vector<4x16x64xf32>
    "tpu.trace_stop"() : () -> ()
    %102 = vector.shape_cast %101 : vector<4x16x64xf32> to vector<2x32x64xf32>
    %cst_57 = arith.constant 0.000000e+00 : f32
    %103 = vector.broadcast %cst_57 : f32 to vector<32x128xf32>
    %104 = vector.extract_strided_slice %102 {offsets = [0, 0, 0], sizes = [1, 32, 64], strides = [1, 1, 1]} : vector<2x32x64xf32> to vector<1x32x64xf32>
    %105 = vector.shape_cast %104 : vector<1x32x64xf32> to vector<32x64xf32>
    %106 = arith.truncf %105 : vector<32x64xf32> to vector<32x64xbf16>
    %c0_58 = arith.constant 0 : index
    %c0_59 = arith.constant 0 : index
    %c0_60 = arith.constant 0 : index
    %107 = vector.load %arg10[%c0_58, %c0_59, %c0_60] : memref<2x64x128xbf16, #tpu.memory_space<vmem>>, vector<1x64x128xbf16>
    %108 = vector.shape_cast %107 : vector<1x64x128xbf16> to vector<64x128xbf16>
    %cst_61 = arith.constant dense<0.000000e+00> : vector<32x128xf32>
    %109 = tpu.matmul %106, %108, %cst_61 {dimension_numbers = #tpu.dot_dimension_numbers<[1], [0], [0], [1], [0, 0, 1, 1], [], []>} : vector<32x64xbf16>, vector<64x128xbf16>, vector<32x128xf32> -> vector<32x128xf32>
    %110 = arith.addf %103, %109 : vector<32x128xf32>
    %111 = vector.extract_strided_slice %102 {offsets = [1, 0, 0], sizes = [1, 32, 64], strides = [1, 1, 1]} : vector<2x32x64xf32> to vector<1x32x64xf32>
    %112 = vector.shape_cast %111 : vector<1x32x64xf32> to vector<32x64xf32>
    %113 = arith.truncf %112 : vector<32x64xf32> to vector<32x64xbf16>
    %c1_62 = arith.constant 1 : index
    %c0_63 = arith.constant 0 : index
    %c0_64 = arith.constant 0 : index
    %114 = vector.load %arg10[%c1_62, %c0_63, %c0_64] : memref<2x64x128xbf16, #tpu.memory_space<vmem>>, vector<1x64x128xbf16>
    %115 = vector.shape_cast %114 : vector<1x64x128xbf16> to vector<64x128xbf16>
    %cst_65 = arith.constant dense<0.000000e+00> : vector<32x128xf32>
    %116 = tpu.matmul %113, %115, %cst_65 {dimension_numbers = #tpu.dot_dimension_numbers<[1], [0], [0], [1], [0, 0, 1, 1], [], []>} : vector<32x64xbf16>, vector<64x128xbf16>, vector<32x128xf32> -> vector<32x128xf32>
    %117 = arith.addf %110, %116 : vector<32x128xf32>
    %c0_66 = arith.constant 0 : index
    %c0_67 = arith.constant 0 : index
    %118 = vector.load %arg11[%c0_66, %c0_67] : memref<1x128xf32, #tpu.memory_space<vmem>>, vector<1x128xf32>
    %119 = vector.broadcast %118 : vector<1x128xf32> to vector<32x128xf32>
    %120 = arith.addf %117, %119 : vector<32x128xf32>
    %121 = arith.addf %1, %120 : vector<32x128xf32>
    %c0_68 = arith.constant 0 : index
    %c0_69 = arith.constant 0 : index
    %122 = vector.load %arg12[%c0_68, %c0_69] : memref<1x128xf32, #tpu.memory_space<vmem>>, vector<1x128xf32>
    %c0_70 = arith.constant 0 : index
    %c0_71 = arith.constant 0 : index
    %123 = vector.load %arg13[%c0_70, %c0_71] : memref<1x128xf32, #tpu.memory_space<vmem>>, vector<1x128xf32>
    %cst_72 = arith.constant dense<0.000000e+00> : vector<32xf32>
    %124 = vector.multi_reduction <add>, %121, %cst_72 [1] : vector<32x128xf32> to vector<32xf32>
    %125 = vector.shape_cast %124 : vector<32xf32> to vector<32x1xf32>
    %cst_73 = arith.constant 1.280000e+02 : f32
    %126 = vector.broadcast %cst_73 : f32 to vector<32x1xf32>
    %127 = arith.divf %125, %126 : vector<32x1xf32>
    %128 = vector.broadcast %127 : vector<32x1xf32> to vector<32x128xf32>
    %129 = arith.subf %121, %128 : vector<32x128xf32>
    %130 = arith.mulf %129, %129 : vector<32x128xf32>
    %cst_74 = arith.constant dense<0.000000e+00> : vector<32xf32>
    %131 = vector.multi_reduction <add>, %130, %cst_74 [1] : vector<32x128xf32> to vector<32xf32>
    %132 = vector.shape_cast %131 : vector<32xf32> to vector<32x1xf32>
    %cst_75 = arith.constant 0.00787401571 : f32
    %133 = vector.broadcast %cst_75 : f32 to vector<32x1xf32>
    %134 = arith.mulf %132, %133 : vector<32x1xf32>
    %135 = math.sqrt %134 : vector<32x1xf32>
    %cst_76 = arith.constant 9.99999997E-7 : f32
    %136 = vector.broadcast %cst_76 : f32 to vector<32x1xf32>
    %137 = arith.addf %135, %136 : vector<32x1xf32>
    %138 = tpu.reciprocal %137 {approx = true} : vector<32x1xf32> -> vector<32x1xf32>
    %139 = vector.broadcast %127 : vector<32x1xf32> to vector<32x128xf32>
    %140 = arith.subf %121, %139 : vector<32x128xf32>
    %141 = vector.broadcast %122 : vector<1x128xf32> to vector<32x128xf32>
    %142 = arith.mulf %141, %140 : vector<32x128xf32>
    %143 = vector.broadcast %138 : vector<32x1xf32> to vector<32x128xf32>
    %144 = arith.mulf %142, %143 : vector<32x128xf32>
    %145 = vector.broadcast %123 : vector<1x128xf32> to vector<32x128xf32>
    %146 = arith.addf %145, %144 : vector<32x128xf32>
    %147 = arith.truncf %146 : vector<32x128xf32> to vector<32x128xbf16>
    %c0_77 = arith.constant 0 : index
    %c0_78 = arith.constant 0 : index
    %148 = vector.load %arg14[%c0_77, %c0_78] : memref<128x256xbf16, #tpu.memory_space<vmem>>, vector<128x256xbf16>
    %cst_79 = arith.constant dense<0.000000e+00> : vector<32x256xf32>
    %149 = tpu.matmul %147, %148, %cst_79 {dimension_numbers = #tpu.dot_dimension_numbers<[1], [0], [0], [1], [0, 0, 1, 1], [], []>} : vector<32x128xbf16>, vector<128x256xbf16>, vector<32x256xf32> -> vector<32x256xf32>
    %c0_80 = arith.constant 0 : index
    %c0_81 = arith.constant 0 : index
    %150 = vector.load %arg15[%c0_80, %c0_81] : memref<1x256xf32, #tpu.memory_space<vmem>>, vector<1x256xf32>
    %151 = vector.broadcast %150 : vector<1x256xf32> to vector<32x256xf32>
    %152 = arith.addf %149, %151 : vector<32x256xf32>
    %cst_82 = arith.constant 0.000000e+00 : f32
    %153 = vector.broadcast %cst_82 : f32 to vector<32x256xf32>
    %154 = arith.maximumf %152, %153 : vector<32x256xf32>
    %155 = arith.truncf %154 : vector<32x256xf32> to vector<32x256xbf16>
    %c0_83 = arith.constant 0 : index
    %c0_84 = arith.constant 0 : index
    %156 = vector.load %arg16[%c0_83, %c0_84] : memref<256x128xbf16, #tpu.memory_space<vmem>>, vector<256x128xbf16>
    %cst_85 = arith.constant dense<0.000000e+00> : vector<32x128xf32>
    %157 = tpu.matmul %155, %156, %cst_85 {dimension_numbers = #tpu.dot_dimension_numbers<[1], [0], [0], [1], [0, 0, 1, 1], [], []>} : vector<32x256xbf16>, vector<256x128xbf16>, vector<32x128xf32> -> vector<32x128xf32>
    %c0_86 = arith.constant 0 : index
    %c0_87 = arith.constant 0 : index
    %158 = vector.load %arg17[%c0_86, %c0_87] : memref<1x128xf32, #tpu.memory_space<vmem>>, vector<1x128xf32>
    %159 = vector.broadcast %158 : vector<1x128xf32> to vector<32x128xf32>
    %160 = arith.addf %157, %159 : vector<32x128xf32>
    %161 = arith.addf %121, %160 : vector<32x128xf32>
    %162 = vector.shape_cast %161 : vector<32x128xf32> to vector<2x16x128xf32>
    %c0_88 = arith.constant 0 : index
    %c0_89 = arith.constant 0 : index
    %c0_90 = arith.constant 0 : index
    %163 = vector.load %arg18[%c0_88, %c0_89, %c0_90] : memref<2x16x128xf32, #tpu.memory_space<vmem>>, vector<2x16x128xf32>
    tpu.vector_store %arg18[%c0_88, %c0_89, %c0_90], %162 {strides = array<i32>} : memref<2x16x128xf32, #tpu.memory_space<vmem>>, vector<2x16x128xf32>,
    return
  }
  func.func @transform_0(%arg0: i32) -> (i32, i32, i32) {
    %c0_i32 = arith.constant 0 : i32
    %c0_i32_0 = arith.constant 0 : i32
    %c0_i32_1 = arith.constant 0 : i32
    return %arg0, %c0_i32, %c0_i32_0 : i32, i32, i32
  }
  func.func @transform_1(%arg0: i32) -> (i32, i32) {
    %c0_i32 = arith.constant 0 : i32
    %c0_i32_0 = arith.constant 0 : i32
    %c0_i32_1 = arith.constant 0 : i32
    return %c0_i32, %c0_i32_0 : i32, i32
  }
  func.func @transform_2(%arg0: i32) -> (i32, i32) {
    %c0_i32 = arith.constant 0 : i32
    %c0_i32_0 = arith.constant 0 : i32
    %c0_i32_1 = arith.constant 0 : i32
    return %c0_i32, %c0_i32_0 : i32, i32
  }
  func.func @transform_3(%arg0: i32) -> (i32, i32, i32) {
    %c0_i32 = arith.constant 0 : i32
    %c0_i32_0 = arith.constant 0 : i32
    %c0_i32_1 = arith.constant 0 : i32
    %c0_i32_2 = arith.constant 0 : i32
    return %c0_i32, %c0_i32_0, %c0_i32_1 : i32, i32, i32
  }
  func.func @transform_4(%arg0: i32) -> (i32, i32, i32) {
    %c0_i32 = arith.constant 0 : i32
    %c0_i32_0 = arith.constant 0 : i32
    %c0_i32_1 = arith.constant 0 : i32
    %c0_i32_2 = arith.constant 0 : i32
    return %c0_i32, %c0_i32_0, %c0_i32_1 : i32, i32, i32
  }
  func.func @transform_5(%arg0: i32) -> (i32, i32, i32) {
    %c0_i32 = arith.constant 0 : i32
    %c0_i32_0 = arith.constant 0 : i32
    %c0_i32_1 = arith.constant 0 : i32
    %c0_i32_2 = arith.constant 0 : i32
    return %c0_i32, %c0_i32_0, %c0_i32_1 : i32, i32, i32
  }
  func.func @transform_6(%arg0: i32) -> (i32, i32, i32) {
    %c0_i32 = arith.constant 0 : i32
    %c0_i32_0 = arith.constant 0 : i32
    %c0_i32_1 = arith.constant 0 : i32
    %c0_i32_2 = arith.constant 0 : i32
    return %c0_i32, %c0_i32_0, %c0_i32_1 : i32, i32, i32
  }
  func.func @transform_7(%arg0: i32) -> (i32, i32, i32) {
    %c0_i32 = arith.constant 0 : i32
    %c0_i32_0 = arith.constant 0 : i32
    %c0_i32_1 = arith.constant 0 : i32
    %c0_i32_2 = arith.constant 0 : i32
    return %c0_i32, %c0_i32_0, %c0_i32_1 : i32, i32, i32
  }
  func.func @transform_8(%arg0: i32) -> (i32, i32, i32) {
    %c0_i32 = arith.constant 0 : i32
    %c0_i32_0 = arith.constant 0 : i32
    %c0_i32_1 = arith.constant 0 : i32
    %c0_i32_2 = arith.constant 0 : i32
    return %c0_i32, %c0_i32_0, %c0_i32_1 : i32, i32, i32
  }
  func.func @transform_9(%arg0: i32) -> (i32, i32, i32) {
    %c0_i32 = arith.constant 0 : i32
    %c0_i32_0 = arith.constant 0 : i32
    %c0_i32_1 = arith.constant 0 : i32
    %c0_i32_2 = arith.constant 0 : i32
    return %c0_i32, %c0_i32_0, %c0_i32_1 : i32, i32, i32
  }
  func.func @transform_10(%arg0: i32) -> (i32, i32) {
    %c0_i32 = arith.constant 0 : i32
    %c0_i32_0 = arith.constant 0 : i32
    %c0_i32_1 = arith.constant 0 : i32
    return %c0_i32, %c0_i32_0 : i32, i32
  }
  func.func @transform_11(%arg0: i32) -> (i32, i32) {
    %c0_i32 = arith.constant 0 : i32
    %c0_i32_0 = arith.constant 0 : i32
    %c0_i32_1 = arith.constant 0 : i32
    return %c0_i32, %c0_i32_0 : i32, i32
  }
  func.func @transform_12(%arg0: i32) -> (i32, i32) {
    %c0_i32 = arith.constant 0 : i32
    %c0_i32_0 = arith.constant 0 : i32
    %c0_i32_1 = arith.constant 0 : i32
    return %c0_i32, %c0_i32_0 : i32, i32
  }
  func.func @transform_13(%arg0: i32) -> (i32, i32) {
    %c0_i32 = arith.constant 0 : i32
    %c0_i32_0 = arith.constant 0 : i32
    %c0_i32_1 = arith.constant 0 : i32
    return %c0_i32, %c0_i32_0 : i32, i32
  }
  func.func @transform_14(%arg0: i32) -> (i32, i32) {
    %c0_i32 = arith.constant 0 : i32
    %c0_i32_0 = arith.constant 0 : i32
    %c0_i32_1 = arith.constant 0 : i32
    return %c0_i32, %c0_i32_0 : i32, i32
  }
  func.func @transform_15(%arg0: i32) -> (i32, i32) {
    %c0_i32 = arith.constant 0 : i32
    %c0_i32_0 = arith.constant 0 : i32
    %c0_i32_1 = arith.constant 0 : i32
    return %c0_i32, %c0_i32_0 : i32, i32
  }
  func.func @transform_16(%arg0: i32) -> (i32, i32) {
    %c0_i32 = arith.constant 0 : i32
    %c0_i32_0 = arith.constant 0 : i32
    %c0_i32_1 = arith.constant 0 : i32
    return %c0_i32, %c0_i32_0 : i32, i32
  }
  func.func @transform_17(%arg0: i32) -> (i32, i32, i32) {
    %c0_i32 = arith.constant 0 : i32
    %c0_i32_0 = arith.constant 0 : i32
    %c0_i32_1 = arith.constant 0 : i32
    return %arg0, %c0_i32, %c0_i32_0 : i32, i32, i32
  }
}

</mosaic_0001>

<bundles_post_ra>
// kernel: tpu_custom_call.1
= control target key start
LH: loop header
LB: loop body
LE: loop exit
PB: predicated region body
PF: predicated region fallthrough
CT: control target
= control target key end

     0   :  { %s3624_s0 = inlined_call_operand.vmem [shape: f32[4,16,128], index: 0, kind: input, shape index: {}]   ;;  %s3625_s1 = inlined_call_operand.vmem [shape: f32[1,128], index: 1, kind: input, shape index: {}]   ;;  %s3626_s2 = inlined_call_operand.vmem [shape: f32[1,128], index: 2, kind: input, shape index: {}]   ;;  %s3627_s3 = inlined_call_operand.vmem [shape: bf16[2,128,64], index: 3, kind: input, shape index: {}]   ;;  %s3628_s4 = inlined_call_operand.vmem [shape: f32[2,1,64], index: 4, kind: input, shape index: {}]   ;;  %s3629_s5 = inlined_call_operand.vmem [shape: bf16[2,128,64], index: 5, kind: input, shape index: {}]   ;;  %s3630_s6 = inlined_call_operand.vmem [shape: f32[2,1,64], index: 6, kind: input, shape index: {}]   ;;  %s3631_s7 = inlined_call_operand.vmem [shape: bf16[2,128,64], index: 7, kind: input, shape index: {}]   ;;  %s3632_s8 = inlined_call_operand.vmem [shape: f32[2,1,64], index: 8, kind: input, shape index: {}]   ;;  %s3633_s9 = inlined_call_operand.vmem [shape: bf16[2,64,128], index: 9, kind: input, shape index: {}]   ;;  %s3634_s10 = inlined_call_operand.vmem [shape: f32[1,128], index: 10, kind: input, shape index: {}]   ;;  %s3635_s11 = inlined_call_operand.vmem [shape: f32[1,128], index: 11, kind: input, shape index: {}]   ;;  %s3636_s12 = inlined_call_operand.vmem [shape: f32[1,128], index: 12, kind: input, shape index: {}]   ;;  %s3637_s13 = inlined_call_operand.vmem [shape: bf16[128,256], index: 13, kind: input, shape index: {}]   ;;  %s3638_s14 = inlined_call_operand.vmem [shape: f32[1,256], index: 14, kind: input, shape index: {}]   ;;  %s3639_s15 = inlined_call_operand.vmem [shape: bf16[256,128], index: 15, kind: input, shape index: {}]   ;;  %s3640_s16 = inlined_call_operand.vmem [shape: f32[1,128], index: 16, kind: input, shape index: {}]   ;;  %s3641_s17 = inlined_call_operand.hbm [shape: f32[4,16,128], index: 17, kind: output, shape index: {}]  }
   0x1   :  { %3647 = sst [smem:[#allocation10_spill]] %s3624_s0 }
   0x2   :  { %3648 = sst [smem:[#allocation11_spill]] %s3625_s1 }
   0x3   :  { %3649 = sst [smem:[#allocation12_spill]] %s3626_s2 }
   0x4   :  { %3650 = sst [smem:[#allocation13_spill]] %s3627_s3 }
   0x5   :  { %22 = vsyncpa [#allocation3], 0 }
   0x6   :  { %24 = vsyncpa [#allocation3 + $0x1], 0  ;;  %s3024_s24 = smov 0   ;;  %s3026_s25 = smov 0  }
   0x7   :  { %s3028_s26 = smov 0   ;;  %s3030_s27 = smov 0  }
   0x8 LB: > { %3651 = sst [smem:[#allocation5_spill]] %s2917_s24  ;;  %s3045_s28 = sadd.s32 4294967295, %s2929_s27   ;;  %s2929_s27 = sphi %s3030_s27, %s3664_s27   ;;  %s2925_s26 = sphi %s3028_s26, %s3666_s26   ;;  %s2921_s25 = sphi %s3026_s25, %s3668_s25   ;;  %s2917_s24 = sphi %s3024_s24, %s3667_s24  }
   0x9   : > { %3652 = sst [smem:[#allocation6_spill]] %s2925_s26  ;;  %s2215_s29 = sadd.s32 4294967294, %s2929_s27  }
   0xa   : > { %s3049_s0 = sadd.s32 1, %s2929_s27   ;;  %s399_s30 = sadd.s32 1, %s2925_s26 }
   0xb   : > { %3653 = sst [smem:[#allocation7_spill]] %s3049_s0  ;;  %s396_s18 = ssub.s32 %s2929_s27, %s3049_s0 }
   0xc   : > { %p409_p0 = scmp.ne.s32.totalorder %s2925_s26, %s2921_s25  ;;  %p397_p1 = scmp.eq.s32.totalorder %s396_s18, 0 }
   0xd   : > { %p410_p2 = scmp.eq.s32.totalorder %s3045_s28, 1  ;;  %p415_p3 = scmp.ne.s32.totalorder %s2921_s25, %s2917_s24 }
   0xe   : > { %p416_p4 = scmp.eq.s32.totalorder %s2215_s29, 1  ;;  %p2218_p7 = scmp.ge.s32.totalorder %s2929_s27, 1 }
   0xf   : > { %s3060_s19 = scalar_select %p397_p1, %s2925_s26, %s399_s30  }
  0x10   : > { %p3062_p5 = por %p410_p2, %p409_p0  ;;  %p3066_p6 = por %p416_p4, %p415_p3 }
  0x11   : > { %3654 = sst [smem:[#allocation8_spill]] %s3060_s19  ;;  %p492_p8 = scmp.lt.s32.totalorder %s2929_s27, 3 }
  0x12   : > { %s3656_s20 = scalar_select %p3066_p6, 1, 0 }
  0x13   : > { %p493_p9 = pnand %p2218_p7, %p492_p8 }
  0x14   : > { %3657 = sst [smem:[#allocation9_spill]] %s3656_s20  ;;  %s2220_s21 = sshll.u32 (!%p493_p9), %s3045_s28, 1 }
  0x15   : > { %496 = sbr.rel (%p493_p9) target bundleno = 1763 (0x6e3), region = 88  ;;  %p546_p10 = scmp.lt.s32.totalorder (!%p493_p9), %s2220_s21, 3 }
  0x16   : > { %s3658_s30 = sld [smem:[#allocation10_spill]] (!%p493_p9)  ;;  %s542_s29 = sand.u32 (!%p493_p9), 1, %s2921_s25  }
  0x17   : > { %s3659_s3 = sld [smem:[#allocation13_spill]] (!%p493_p9) }
  0x18   : > { %s3660_s26 = sld [smem:[#allocation11_spill]] (!%p493_p9) }
  0x19   : > { %s3661_s2 = sld [smem:[#allocation12_spill]] (!%p493_p9) }
  0x1a   : > { %s3670_s21 = smov (!%p546_p10, %s2220_s21), 3  ;;  %v2931_v4 = vmov 128.0   ;;  %v2668_v28 = vld [vmem:[%s3629_s5 + $0x38] sm:$0xff]  ;;  %v2667_v32 = vld [vmem:[%s3629_s5 + $0x30] sm:$0xff]  ;;  %v2666_v36 = vld [vmem:[%s3629_s5 + $0x28] sm:$0xff]  ;;  %vm1245_vm9 = vcmask 523264  }
  0x1b   : > { %s2652_s22 = sshll.u32 %s3670_s21, 4  ;;  %2797 = vrcp.f32 %v2931_v4  ;;  %v2676_v29 = vld [vmem:[%s3631_s7 + $0x38] sm:$0xff]  ;;  %830 = vmatpush.bf16.msra.mxu1 %v2668_v28  ;;  %v2675_v33 = vld [vmem:[%s3631_s7 + $0x30] sm:$0xff]  ;;  %v2674_v37 = vld [vmem:[%s3631_s7 + $0x28] sm:$0xff]  ;;  %vm1356_vm10 = vcmask 130048  }
  0x1c   : > { %s3076_s18 = scalar_lea.vmem %s3658_s30, %s2652_s22  ;;  %917 = vmatpush.bf16.msra.mxu2 %v2676_v29  ;;  %v2665_v40 = vld [vmem:[%s3629_s5 + $0x20] sm:$0xff]  ;;  %v2664_v46 = vld [vmem:[%s3629_s5 + $0x18] sm:$0xff]  ;;  %v2663_v52 = vld [vmem:[%s3629_s5 + $0x10] sm:$0xff]  ;;  %s2742_s30 = sshll.u32 %s3045_s28, 5 }
  0x1d   : > { %v556_v0 = vld [vmem:[%s3076_s18 + $0x10] sm:$0xff]  ;;  %v554_v1 = vld [vmem:[%s3076_s18] sm:$0xff]  ;;  %v557_v2 = vld [vmem:[%s3076_s18 + $0x18] sm:$0xff]  ;;  %s2149_s0 = scalar_lea.hbm %s3641_s17, %s2742_s30  ;;  %s2137_s28 = scalar_lea.sflag [#allocation3], %s542_s29 }
  0x1e   : > { %564 = vadd.xlane.f32.xlu1 %v556_v0  ;;  %560 = vadd.xlane.f32.xlu0 %v554_v1  ;;  %v555_v3 = vld [vmem:[%s3076_s18 + $0x8] sm:$0xff]  ;;  %v2660_v27 = vld [vmem:[%s3659_s3 + $0x38] sm:$0xff]  ;;  %v2659_v31 = vld [vmem:[%s3659_s3 + $0x30] sm:$0xff]  ;;  %s2152_s20 = sshll.u32 %s2149_s0, 4  ;;  %s2887_s30 = scalar_lea.hbm %s3641_s17, 64  ;;  %s2153_s20 = int_to_ptr.hbm [resolvable:$true] %s2152_s20 }
  0x1f   : > { %v2684_v30 = vld [vmem:[%s3659_s3 + $0x78] sm:$0xff]  ;;  %743 = vmatpush.bf16.msra.mxu0 %v2660_v27  ;;  %v2683_v34 = vld [vmem:[%s3659_s3 + $0x70] sm:$0xff]  ;;  %831 = vmatpush.bf16.msra.mxu1 %v2667_v32  ;;  %v2658_v35 = vld [vmem:[%s3659_s3 + $0x28] sm:$0xff]  ;;  %s2881_s21 = sshra.s32 %s2153_s20, 4  ;;  %s2882_s21 = int_to_ptr.hbm [resolvable:$true] %s2881_s21 }
  0x20   : > { %1022 = vmatpush.bf16.msra.mxu3 %v2684_v30  ;;  %918 = vmatpush.bf16.msra.mxu2 %v2675_v33  ;;  %v2682_v38 = vld [vmem:[%s3659_s3 + $0x68] sm:$0xff]  ;;  %v2657_v39 = vld [vmem:[%s3659_s3 + $0x20] sm:$0xff]  ;;  %v2656_v45 = vld [vmem:[%s3659_s3 + $0x18] sm:$0xff]  ;;  %s2883_s22 = scalar_lea.hbm %s2882_s21, 32  ;;  %p2888_p0 = scmp.lt.s32.totalorder %s2882_s21, %s3641_s17 }
  0x21   : > { %v2798_v5 = vpop.eup %2797  ;;  %v2673_v41 = vld [vmem:[%s3631_s7 + $0x20] sm:$0xff]  ;;  %v2672_v47 = vld [vmem:[%s3631_s7 + $0x18] sm:$0xff]  ;;  %v2655_v51 = vld [vmem:[%s3659_s3 + $0x10] sm:$0xff]  ;;  %p2884_p11 = scmp.ne.s32.totalorder %s2882_s21, %s2883_s22  ;;  %p2889_p1 = scmp.lt.s32.totalorder %s2887_s30, %s2883_s22 }
  0x22   : > { %v569_v6 = vmul.f32 128.0, %v2798_v5  ;;  %vm573_vm0 = vweird.f32 %v2798_v5  ;;  %v2681_v42 = vld [vmem:[%s3659_s3 + $0x60] sm:$0xff]  ;;  %v2680_v50 = vld [vmem:[%s3659_s3 + $0x58] sm:$0xff]  ;;  %v2671_v53 = vld [vmem:[%s3631_s7 + $0x10] sm:$0xff] }
  0x23   : > { %744 = vmatpush.bf16.msra.mxu0 %v2659_v31  ;;  %832 = vmatpush.bf16.msra.mxu1 %v2666_v36  ;;  %v2679_v54 = vld [vmem:[%s3659_s3 + $0x50] sm:$0xff]  ;;  %v2654_v55 = vld [vmem:[%s3659_s3 + $0x8] sm:$0xff]  ;;  %p2885_p12 = pnand %p2884_p11, %p3062_p5  ;;  %p2890_p2 = por %p2889_p1, %p2888_p0 }
  0x24   : > { %v570_v7 = vsub.f32 1.0, %v569_v6  ;;  %1023 = vmatpush.bf16.msra.mxu3 %v2683_v34  ;;  %919 = vmatpush.bf16.msra.mxu2 %v2674_v37  ;;  %v2662_v56 = vld [vmem:[%s3629_s5 + $0x8] sm:$0xff]  ;;  %v2677_v6 = vld [vmem:[%s3659_s3 + $0x40] sm:$0xff] }
  0x25   : > { %v2670_v57 = vld [vmem:[%s3631_s7 + $0x8] sm:$0xff]  ;;  %p2886_p13 = pneg %p2885_p12 }
  0x26   : > { %566 = vadd.xlane.f32.xlu1 %v557_v2  ;;  %562 = vadd.xlane.f32.xlu0 %v555_v3  ;;  %v571_v8 = vmul.f32 %v2798_v5, %v570_v7  ;;  %v2678_v58 = vld [vmem:[%s3659_s3 + $0x48] sm:$0xff] }
  0x27   : > { %745 = vmatpush.bf16.msra.mxu0 %v2658_v35  ;;  %833 = vmatpush.bf16.msra.mxu1 %v2665_v40  ;;  %v2690_v36 = vld [vmem:[%s3629_s5 + $0x68] sm:$0xff]  ;;  %p2891_p3 = pnand %p2890_p2, %p2886_p13 }
  0x28   : > { %v572_v9 = vadd.f32 %v2798_v5, %v571_v8  ;;  %1024 = vmatpush.bf16.msra.mxu3 %v2682_v38  ;;  %920 = vmatpush.bf16.msra.mxu2 %v2673_v41  ;;  %v2698_v37 = vld [vmem:[%s3631_s7 + $0x68] sm:$0xff] }
  0x2a   : > { %v3082_v10 = vsel %vm573_vm0, %v2798_v5, %v572_v9  ;;  %v2669_v5 = vld [vmem:[%s3631_s7] sm:$0xff] }
  0x2b   : > { %746 = vmatpush.bf16.msra.mxu0 %v2657_v39  ;;  %834 = vmatpush.bf16.msra.mxu1 %v2664_v46  ;;  %v2689_v46 = vld [vmem:[%s3629_s5 + $0x60] sm:$0xff] }
  0x2c   : > { %1025 = vmatpush.bf16.msra.mxu3 %v2681_v42  ;;  %921 = vmatpush.bf16.msra.mxu2 %v2672_v47  ;;  %v2697_v47 = vld [vmem:[%s3631_s7 + $0x60] sm:$0xff] }
  0x2f   : > { %747 = vmatpush.bf16.msra.mxu0 %v2656_v45  ;;  %835 = vmatpush.bf16.msra.mxu1 %v2663_v52 }
  0x30   : > { %1026 = vmatpush.bf16.msra.mxu3 %v2680_v50  ;;  %922 = vmatpush.bf16.msra.mxu2 %v2671_v53 }
  0x33   : > { %748 = vmatpush.bf16.msra.mxu0 %v2655_v51  ;;  %836 = vmatpush.bf16.msra.mxu1 %v2662_v56 }
  0x34   : > { %1027 = vmatpush.bf16.msra.mxu3 %v2679_v54  ;;  %923 = vmatpush.bf16.msra.mxu2 %v2670_v57 }
  0x37   : > { %749 = vmatpush.bf16.msra.mxu0 %v2654_v55 }
  0x38   : > { %1028 = vmatpush.bf16.msra.mxu3 %v2678_v58  ;;  %924 = vmatpush.bf16.msra.mxu2 %v2669_v5  ;;  %v2686_v5 = vld [vmem:[%s3629_s5 + $0x48] sm:$0xff] }
  0x3c   : > { %1029 = vmatpush.bf16.msra.mxu3 %v2677_v6  ;;  %v2694_v6 = vld [vmem:[%s3631_s7 + $0x48] sm:$0xff] }
  0x91   : > { %v565_v11 = vpop.xlane.xlu1 %564  ;;  %v561_v12 = vpop.xlane.xlu0 %560 }
  0x92   : > { %v577_v13 = vmul.f32 %v3082_v10, %v565_v11  ;;  %v575_v14 = vmul.f32 %v3082_v10, %v561_v12 }
  0x94   : > { %v3086_v15 = vsub.f32 %v556_v0, %v577_v13  ;;  %v3088_v16 = vsub.f32 %v554_v1, %v575_v14  ;;  %v2692_v13 = vld [vmem:[%s3629_s5 + $0x78] sm:$0xff] }
  0x95   : > { %v2700_v14 = vld [vmem:[%s3631_s7 + $0x78] sm:$0xff] }
  0x96   : > { %v585_v17 = vmul.f32 %v3086_v15, %v3086_v15  ;;  %v583_v18 = vmul.f32 %v3088_v16, %v3088_v16 }
  0x98   : > { %591 = vadd.xlane.f32.xlu0 %v585_v17  ;;  %587 = vadd.xlane.f32.xlu2 %v583_v18 }
  0x99   : > { %v567_v19 = vpop.xlane.xlu1 %566  ;;  %v563_v20 = vpop.xlane.xlu0 %562 }
  0x9a   : > { %v578_v21 = vmul.f32 %v3082_v10, %v567_v19  ;;  %v576_v22 = vmul.f32 %v3082_v10, %v563_v20 }
  0x9c   : > { %v3096_v23 = vsub.f32 %v557_v2, %v578_v21  ;;  %v3098_v24 = vsub.f32 %v555_v3, %v576_v22  ;;  %v2653_v2 = vld [vmem:[%s3659_s3] sm:$0xff]  ;;  %v2691_v22 = vld [vmem:[%s3629_s5 + $0x70] sm:$0xff]  ;;  %s2219_s3 = sshll.u32 %s542_s29, 5 }
  0x9d   : > { %v2661_v3 = vld [vmem:[%s3629_s5] sm:$0xff]  ;;  %750 = vmatpush.bf16.msra.mxu0 %v2653_v2  ;;  %s544_s19 = scalar_lea.vmem [#allocation2], %s2219_s3 }
  0x9e   : > { %v586_v25 = vmul.f32 %v3096_v23, %v3096_v23  ;;  %v584_v26 = vmul.f32 %v3098_v24, %v3098_v24  ;;  %837 = vmatpush.bf16.msra.mxu1 %v2661_v3  ;;  %s2150_s24 = sshll.u32 %s544_s19, 4  ;;  %s2151_s24 = int_to_ptr.vmem [resolvable:$true] %s2150_s24 }
  0xa0   : > { %593 = vadd.xlane.f32.xlu1 %v586_v25  ;;  %589 = vadd.xlane.f32.xlu2 %v584_v26  ;;  %v2699_v25 = vld [vmem:[%s3631_s7 + $0x70] sm:$0xff] }
  0xa1   : > { %1111 = vmatpush.bf16.msrb.mxu0 %v2692_v13 }
  0xa2   : > { %1200 = vmatpush.bf16.msrb.mxu1 %v2700_v14 }
  0xa5   : > { %1112 = vmatpush.bf16.msrb.mxu0 %v2691_v22 }
  0xa6   : > { %1201 = vmatpush.bf16.msrb.mxu1 %v2699_v25 }
  0xa9   : > { %1113 = vmatpush.bf16.msrb.mxu0 %v2690_v36 }
  0xaa   : > { %1202 = vmatpush.bf16.msrb.mxu1 %v2698_v37 }
  0xad   : > { %1114 = vmatpush.bf16.msrb.mxu0 %v2689_v46 }
  0xae   : > { %1203 = vmatpush.bf16.msrb.mxu1 %v2697_v47 }
 0x10b   : > { %v588_v43 = vpop.xlane.xlu2 %587  ;;  %v592_v44 = vpop.xlane.xlu0 %591 }
 0x10c   : > { %v3161_v48 = vmul.f32 0.007874016, %v588_v43  ;;  %v3163_v49 = vmul.f32 0.007874016, %v592_v44 }
 0x10e   : > { %2799 = vrsqrt.f32 %v3161_v48  ;;  %vm606_vm1 = vcmp.eq.f32.partialorder %v3161_v48, inf  ;;  %v609_v30 = vand.u32 2147483648, %v3161_v48  ;;  %vm630_vm2 = vcmp.eq.f32.partialorder %v3163_v49, inf }
 0x10f   : > { %2801 = vrsqrt.f32 %v3163_v49  ;;  %v633_v34 = vand.u32 2147483648, %v3163_v49  ;;  %vm608_vm3 = vcmp.eq.f32.partialorder %v3161_v48, 0.0  ;;  %vm632_vm4 = vcmp.eq.f32.partialorder %v3163_v49, 0.0 }
 0x113   : > { %v594_v59 = vpop.xlane.xlu1 %593  ;;  %v590_v60 = vpop.xlane.xlu2 %589 }
 0x114   : > { %v2800_v61 = vpop.eup %2799  ;;  %v3194_v62 = vmul.f32 0.007874016, %v594_v59  ;;  %v3196_v63 = vmul.f32 0.007874016, %v590_v60  ;;  %v2688_v59 = vld [vmem:[%s3629_s5 + $0x58] sm:$0xff] }
 0x115   : > { %v2802_v0 = vpop.eup %2801  ;;  %v600_v1 = vmul.f32 %v2800_v61, %v3161_v48  ;;  %v2696_v60 = vld [vmem:[%s3631_s7 + $0x58] sm:$0xff]  ;;  %1115 = vmatpush.bf16.msrb.mxu0 %v2688_v59 }
 0x116   : > { %v624_v4 = vmul.f32 %v2802_v0, %v3163_v49  ;;  %2803 = vrsqrt.f32 %v3194_v62  ;;  %vm642_vm5 = vcmp.eq.f32.partialorder %v3194_v62, inf  ;;  %vm644_vm6 = vcmp.eq.f32.partialorder %v3194_v62, 0.0  ;;  %1204 = vmatpush.bf16.msrb.mxu1 %v2696_v60 }
 0x117   : > { %v601_v7 = vmul.f32 %v2800_v61, %v600_v1  ;;  %2805 = vrsqrt.f32 %v3196_v63  ;;  %v645_v51 = vand.u32 2147483648, %v3194_v62  ;;  %vm618_vm7 = vcmp.eq.f32.partialorder %v3196_v63, inf }
 0x118   : > { %v625_v8 = vmul.f32 %v2802_v0, %v624_v4  ;;  %v621_v54 = vand.u32 2147483648, %v3196_v63  ;;  %vm620_vm8 = vcmp.eq.f32.partialorder %v3196_v63, 0.0 }
 0x119   : > { %v602_v9 = vmul.f32 0.5, %v601_v7 }
 0x11a   : > { %v626_v11 = vmul.f32 0.5, %v625_v8  ;;  %v2786_v8 = vld [vmem:[%s3661_s2] ss:$0 sm:$0xff] }
 0x11b   : > { %v603_v12 = vsub.f32 1.5, %v602_v9 }
 0x11c   : > { %v2804_v17 = vpop.eup %2803  ;;  %v627_v18 = vsub.f32 1.5, %v626_v11 }
 0x11d   : > { %v2806_v19 = vpop.eup %2805  ;;  %v604_v20 = vmul.f32 %v2800_v61, %v603_v12  ;;  %v636_v21 = vmul.f32 %v2804_v17, %v3194_v62 }
 0x11e   : > { %v628_v26 = vmul.f32 %v2802_v0, %v627_v18  ;;  %v612_v27 = vmul.f32 %v2806_v19, %v3196_v63  ;;  %v2695_v0 = vld [vmem:[%s3631_s7 + $0x50] sm:$0xff] }
 0x11f   : > { %v605_v28 = vmul.f32 %v604_v20, %v3161_v48  ;;  %v637_v29 = vmul.f32 %v2804_v17, %v636_v21  ;;  %1205 = vmatpush.bf16.msrb.mxu1 %v2695_v0 }
 0x120   : > { %v629_v31 = vmul.f32 %v628_v26, %v3163_v49  ;;  %v613_v32 = vmul.f32 %v2806_v19, %v612_v27  ;;  %v2788_v27 = vld [vmem:[%s3630_s6] ss:$0 sm:$0xff] }
 0x121   : > { %v607_v33 = vsel %vm606_vm1, %v3161_v48, %v605_v28  ;;  %v638_v35 = vmul.f32 0.5, %v637_v29  ;;  %v2787_v28 = vld [vmem:[%s3628_s4] ss:$0 sm:$0xff] }
 0x122   : > { %v631_v38 = vsel %vm630_vm2, %v3163_v49, %v629_v31  ;;  %v614_v39 = vmul.f32 0.5, %v613_v32  ;;  %v610_v40 = vsel %vm608_vm3, %v609_v30, %v607_v33  ;;  %v2789_v31 = vld [vmem:[%s3632_s8] ss:$0 sm:$0xff] }
 0x123   : > { %v634_v41 = vsel %vm632_vm4, %v633_v34, %v631_v38  ;;  %v639_v42 = vsub.f32 1.5, %v638_v35  ;;  %v647_v48 = vadd.f32 1e-06, %v610_v40  ;;  %1206 = vmatpush.bf16.msrb.mxu1 %v2694_v6 }
 0x124   : > { %v615_v43 = vsub.f32 1.5, %v614_v39  ;;  %v649_v44 = vadd.f32 1e-06, %v634_v41 }
 0x125   : > { %v640_v45 = vmul.f32 %v2804_v17, %v639_v42  ;;  %v2685_v17 = vld [vmem:[%s3629_s5 + $0x40] sm:$0xff] }
 0x126   : > { %v616_v50 = vmul.f32 %v2806_v19, %v615_v43  ;;  %2807 = vrcp.f32 %v649_v44 }
 0x127   : > { %v641_v49 = vmul.f32 %v640_v45, %v3194_v62  ;;  %2809 = vrcp.f32 %v647_v48 }
 0x128   : > { %v617_v52 = vmul.f32 %v616_v50, %v3196_v63 }
 0x129   : > { %v643_v53 = vsel %vm642_vm5, %v3194_v62, %v641_v49  ;;  %v2785_v62 = vld [vmem:[%s3660_s26] ss:$0 sm:$0xff] }
 0x12a   : > { %v646_v55 = vsel %vm644_vm6, %v645_v51, %v643_v53  ;;  %v619_v56 = vsel %vm618_vm7, %v3196_v63, %v617_v52  ;;  %v2687_v63 = vld [vmem:[%s3629_s5 + $0x50] sm:$0xff]  ;;  %v660_v3 = vmul.f32 %v2785_v62, %v3086_v15  ;;  %v658_v4 = vmul.f32 %v2785_v62, %v3088_v16 }
 0x12b   : > { %v650_v57 = vadd.f32 1e-06, %v646_v55  ;;  %v622_v58 = vsel %vm620_vm8, %v621_v54, %v619_v56  ;;  %1116 = vmatpush.bf16.msrb.mxu0 %v2687_v63  ;;  %v661_v7 = vmul.f32 %v2785_v62, %v3096_v23  ;;  %v659_v16 = vmul.f32 %v2785_v62, %v3098_v24  ;;  %v2693_v23 = vld [vmem:[%s3631_s7 + $0x40] sm:$0xff] }
 0x12c   : > { %v648_v61 = vadd.f32 1e-06, %v622_v58  ;;  %v2808_v1 = vpop.eup %2807  ;;  %1207 = vmatpush.bf16.msrb.mxu1 %v2693_v23 }
 0x12d   : > { %2811 = vrcp.f32 %v650_v57  ;;  %v2810_v2 = vpop.eup %2809  ;;  %v664_v9 = vmul.f32 %v2808_v1, %v660_v3 }
 0x12e   : > { %2813 = vrcp.f32 %v648_v61  ;;  %v662_v11 = vmul.f32 %v2810_v2, %v658_v4 }
 0x12f   : > { %1117 = vmatpush.bf16.msrb.mxu0 %v2686_v5  ;;  %v671_v18 = vadd.f32 %v2786_v8, %v664_v9 }
 0x130   : > { %v669_v20 = vadd.f32 %v2786_v8, %v662_v11 }
 0x133   : > { %v2812_v15 = vpop.eup %2811  ;;  %1118 = vmatpush.bf16.msrb.mxu0 %v2685_v17 }
 0x134   : > { %v2814_v12 = vpop.eup %2813  ;;  %v665_v13 = vmul.f32 %v2812_v15, %v661_v7 }
 0x135   : > { %v663_v14 = vmul.f32 %v2814_v12, %v659_v16 }
 0x136   : > { %v672_v19 = vadd.f32 %v2786_v8, %v665_v13 }
 0x137   : > { %v670_v21 = vadd.f32 %v2786_v8, %v663_v14 }
 0x138   : > { %v674_v22 = vpack.c.bf16 %v672_v19, %v671_v18 }
 0x139   : > { %v673_v24 = vpack.c.bf16 %v670_v21, %v669_v20  ;;  %v2791_v20 = vld [vmem:[%s3630_s6 + $0x1] ss:$0 sm:$0xff] }
 0x13b   : > { %751 = vmatmul.bf16.vlgmr.msra.gmra.mxu0 %v673_v24  ;;  %838 = vmatmul.bf16.vlgmr.msra.gmra.mxu1 %v673_v24 }
 0x13c   : > { %925 = vmatmul.bf16.vlgmr.msra.gmra.mxu2 %v673_v24  ;;  %1030 = vmatmul.bf16.vlgmr.msra.gmra.mxu3 %v673_v24 }
 0x14b   : > { %756 = vmatmul.bf16.gmra.mxu0 %v674_v22  ;;  %843 = vmatmul.bf16.gmra.mxu1 %v674_v22 }
 0x14c   : > { %930 = vmatmul.bf16.gmra.mxu2 %v674_v22  ;;  %1035 = vmatmul.bf16.gmra.mxu3 %v674_v22 }
 0x15b   : > { %1119 = vmatmul.bf16.vlgmr.msrb.gmra.mxu0 %v673_v24  ;;  %1208 = vmatmul.bf16.vlgmr.msrb.gmra.mxu1 %v673_v24 }
 0x16b   : > { %1124 = vmatmul.bf16.gmra.mxu0 %v674_v22  ;;  %1213 = vmatmul.bf16.gmra.mxu1 %v674_v22 }
 0x1b8   : > { %v752_v25 = vpop.f32.mrf.mxu0  ;;  %v839_v26 = vpop.f32.mrf.mxu1 }
 0x1b9   : > { %v840_v29 = vadd.f32 %v2788_v27, %v839_v26  ;;  %v753_v34 = vadd.f32 %v2787_v28, %v752_v25  ;;  %v2792_v25 = vld [vmem:[%s3632_s8 + $0x1] ss:$0 sm:$0xff] }
 0x1bb   : > { %v944_v35 = vpack.c.bf16 %v840_v29, %v840_v29  ;;  %v936_v41 = vmul.f32 0.125, %v753_v34 }
 0x1bd   : > { %v1242_v42 = vunpack.c.l.b16 %v944_v35  ;;  %v940_v51 = vpack.c.bf16 %v936_v41, %v936_v41 }
 0x1bf   : > { %v926_v30 = vpop.f32.mrf.mxu2  ;;  %v1237_v57 = vunpack.c.l.b16 %v940_v51  ;;  %v1031_v58 = vpop.f32.mrf.mxu3 }
 0x1c0   : > { %v754_v32 = vpop.f32.mrf.mxu0  ;;  %v841_v33 = vpop.f32.mrf.mxu1  ;;  %v927_v40 = vadd.f32 %v2789_v31, %v926_v30 }
 0x1c1   : > { %v755_v36 = vadd.f32 %v2787_v28, %v754_v32  ;;  %v842_v37 = vadd.f32 %v2788_v27, %v841_v33 }
 0x1c2   : > { %v948_v47 = vpack.c.bf16 %v927_v40, %v927_v40 }
 0x1c3   : > { %v937_v38 = vmul.f32 0.125, %v755_v36  ;;  %v945_v39 = vpack.c.bf16 %v842_v37, %v842_v37 }
 0x1c4   : > { %v1460_v55 = vunpack.c.l.b16 %v948_v47 }
 0x1c5   : > { %v1243_v43 = vunpack.c.l.b16 %v945_v39  ;;  %v941_v44 = vpack.c.bf16 %v937_v38, %v937_v38 }
 0x1c7   : > { %v928_v45 = vpop.f32.mrf.mxu2  ;;  %v1244_v46 = vpack.c.b16 %v1243_v43, %v1242_v42  ;;  %v1238_v54 = vunpack.c.l.b16 %v941_v44  ;;  %v1033_v16 = vpop.f32.mrf.mxu3 }
 0x1c8   : > { %v929_v48 = vadd.f32 %v2789_v31, %v928_v45  ;;  %v757_v50 = vpop.f32.mrf.mxu0  ;;  %v844_v49 = vpop.f32.mrf.mxu1 }
 0x1c9   : > { %v1250_v52 = vsel %vm1245_vm9, %v1244_v46, 0  ;;  %v845_v59 = vadd.f32 %v2788_v27, %v844_v49  ;;  %v1239_v61 = vpack.c.b16 %v1238_v54, %v1237_v57  ;;  %v758_v1 = vadd.f32 %v2787_v28, %v757_v50 }
 0x1ca   : > { %v949_v53 = vpack.c.bf16 %v929_v48, %v929_v48  ;;  %1259 = vmatpush.bf16.xpose.msrb.mxu2 %v1250_v52 }
 0x1cb   : > { %v946_v2 = vpack.c.bf16 %v845_v59, %v845_v59  ;;  %v938_v8 = vmul.f32 0.125, %v758_v1 }
 0x1cc   : > { %v1461_v56 = vunpack.c.l.b16 %v949_v53 }
 0x1cd   : > { %v1273_v9 = vunpack.c.l.b16 %v946_v2  ;;  %v942_v19 = vpack.c.bf16 %v938_v8, %v938_v8 }
 0x1ce   : > { %v1462_v60 = vpack.c.b16 %v1461_v56, %v1460_v55 }
 0x1cf   : > { %v931_v62 = vpop.f32.mrf.mxu2  ;;  %v1268_v29 = vunpack.c.l.b16 %v942_v19  ;;  %v1036_v41 = vpop.f32.mrf.mxu3 }
 0x1d0   : > { %1474 = vmatpush.bf16.msra.mxu0 %v1462_v60  ;;  %v759_v63 = vpop.f32.mrf.mxu0  ;;  %v846_v0 = vpop.f32.mrf.mxu1  ;;  %v932_v7 = vadd.f32 %v2789_v31, %v931_v62 }
 0x1d1   : > { %v760_v3 = vadd.f32 %v2787_v28, %v759_v63  ;;  %v847_v4 = vadd.f32 %v2788_v27, %v846_v0  ;;  %2466 = vmatmul.msk.bf16.vlgmr.msrb.gmra.mxu2 %vm1245_vm9, %v1239_v61  ;;  %v2790_v28 = vld [vmem:[%s3628_s4 + $0x1] ss:$0 sm:$0xff] }
 0x1d2   : > { %v950_v14 = vpack.c.bf16 %v932_v7, %v932_v7  ;;  %v1034_v32 = vadd.f32 %v2790_v28, %v1033_v16  ;;  %v1032_v37 = vadd.f32 %v2790_v28, %v1031_v58 }
 0x1d3   : > { %v939_v5 = vmul.f32 0.125, %v760_v3  ;;  %v947_v6 = vpack.c.bf16 %v847_v4, %v847_v4  ;;  %v1037_v3 = vadd.f32 %v2790_v28, %v1036_v41 }
 0x1d4   : > { %v1488_v26 = vunpack.c.l.b16 %v950_v14  ;;  %v1220_v42 = vmul.f32 0.125, %v1034_v32  ;;  %v1219_v46 = vmul.f32 0.125, %v1032_v37 }
 0x1d5   : > { %v1274_v15 = vunpack.c.l.b16 %v947_v6  ;;  %v943_v11 = vpack.c.bf16 %v939_v5, %v939_v5  ;;  %v1221_v16 = vmul.f32 0.125, %v1037_v3 }
 0x1d6   : > { %v1224_v49 = vpack.c.bf16 %v1220_v42, %v1220_v42  ;;  %v1223_v55 = vpack.c.bf16 %v1219_v46, %v1219_v46 }
 0x1d7   : > { %v933_v12 = vpop.f32.mrf.mxu2  ;;  %v1275_v13 = vpack.c.b16 %v1274_v15, %v1273_v9  ;;  %v1269_v24 = vunpack.c.l.b16 %v943_v11  ;;  %v1038_v59 = vpop.f32.mrf.mxu3 }
 0x1d8   : > { %v934_v17 = vadd.f32 %v2789_v31, %v933_v12  ;;  %v1120_v23 = vpop.f32.mrf.mxu0  ;;  %v1209_v18 = vpop.f32.mrf.mxu1  ;;  %v1299_v58 = vunpack.c.l.b16 %v1224_v49  ;;  %v1298_v60 = vunpack.c.l.b16 %v1223_v55  ;;  %v1039_v63 = vadd.f32 %v2790_v28, %v1038_v59 }
 0x1d9   : > { %v1280_v21 = vsel %vm1245_vm9, %v1275_v13, 0  ;;  %v1121_v30 = vadd.f32 %v2791_v20, %v1120_v23  ;;  %v1270_v33 = vpack.c.b16 %v1269_v24, %v1268_v29  ;;  %v1210_v34 = vadd.f32 %v2792_v25, %v1209_v18 }
 0x1da   : > { %v951_v22 = vpack.c.bf16 %v934_v17, %v934_v17  ;;  %1289 = vmatpush.bf16.xpose.msrb.mxu3 %v1280_v21  ;;  %v1300_v62 = vpack.c.b16 %v1299_v58, %v1298_v60  ;;  %v1222_v7 = vmul.f32 0.125, %v1039_v63  ;;  %v1225_v18 = vpack.c.bf16 %v1221_v16, %v1221_v16 }
 0x1db   : > { %v1227_v38 = vpack.c.bf16 %v1121_v30, %v1121_v30  ;;  %v1231_v43 = vpack.c.bf16 %v1210_v34, %v1210_v34 }
 0x1dc   : > { %v1489_v27 = vunpack.c.l.b16 %v951_v22  ;;  %v1226_v14 = vpack.c.bf16 %v1222_v7, %v1222_v7  ;;  %v1328_v22 = vunpack.c.l.b16 %v1225_v18 }
 0x1dd   : > { %v1303_v47 = vunpack.c.l.b16 %v1227_v38  ;;  %v1516_v51 = vunpack.c.l.b16 %v1231_v43 }
 0x1de   : > { %v1490_v31 = vpack.c.b16 %v1489_v27, %v1488_v26 }
 0x1e0   : > { %1502 = vmatpush.bf16.msra.mxu1 %v1490_v31  ;;  %v1122_v35 = vpop.f32.mrf.mxu0  ;;  %v1211_v36 = vpop.f32.mrf.mxu1 }
 0x1e1   : > { %v1123_v39 = vadd.f32 %v2791_v20, %v1122_v35  ;;  %v1212_v40 = vadd.f32 %v2792_v25, %v1211_v36  ;;  %2467 = vmatmul.msk.bf16.vlgmr.msrb.gmra.mxu3 %vm1245_vm9, %v1270_v33 }
 0x1e3   : > { %v1228_v44 = vpack.c.bf16 %v1123_v39, %v1123_v39  ;;  %v1232_v45 = vpack.c.bf16 %v1212_v40, %v1212_v40 }
 0x1e5   : > { %v1304_v48 = vunpack.c.l.b16 %v1228_v44  ;;  %v1517_v50 = vunpack.c.l.b16 %v1232_v45 }
 0x1e7   : > { %v1305_v52 = vpack.c.b16 %v1304_v48, %v1303_v47  ;;  %v1518_v56 = vpack.c.b16 %v1517_v50, %v1516_v51 }
 0x1e8   : > { %v1125_v53 = vpop.f32.mrf.mxu0  ;;  %v1214_v54 = vpop.f32.mrf.mxu1 }
 0x1e9   : > { %v1310_v57 = vsel %vm1245_vm9, %v1305_v52, 0  ;;  %v1126_v61 = vadd.f32 %v2791_v20, %v1125_v53  ;;  %v1215_v0 = vadd.f32 %v2792_v25, %v1214_v54 }
 0x1ea   : > { %1319 = vmatpush.bf16.xpose.msra.mxu2 %v1310_v57 }
 0x1eb   : > { %v1229_v4 = vpack.c.bf16 %v1126_v61, %v1126_v61  ;;  %v1233_v8 = vpack.c.bf16 %v1215_v0, %v1215_v0 }
 0x1ed   : > { %v1333_v11 = vunpack.c.l.b16 %v1229_v4  ;;  %v1544_v17 = vunpack.c.l.b16 %v1233_v8 }
 0x1f0   : > { %v1127_v1 = vpop.f32.mrf.mxu0  ;;  %v1216_v2 = vpop.f32.mrf.mxu1 }
 0x1f1   : > { %v1128_v5 = vadd.f32 %v2791_v20, %v1127_v1  ;;  %v1217_v6 = vadd.f32 %v2792_v25, %v1216_v2  ;;  %2468 = vmatmul.msk.bf16.vlgmr.msra.gmra.mxu2 %vm1245_vm9, %v1300_v62  ;;  %v1329_v20 = vunpack.c.l.b16 %v1226_v14 }
 0x1f2   : > { %1530 = vmatpush.bf16.msrb.mxu2 %v1518_v56 }
 0x1f3   : > { %v1230_v9 = vpack.c.bf16 %v1128_v5, %v1128_v5  ;;  %v1234_v15 = vpack.c.bf16 %v1217_v6, %v1217_v6  ;;  %v1330_v24 = vpack.c.b16 %v1329_v20, %v1328_v22 }
 0x1f5   : > { %v1334_v12 = vunpack.c.l.b16 %v1230_v9  ;;  %v1545_v13 = vunpack.c.l.b16 %v1234_v15 }
 0x1f7   : > { %v1335_v23 = vpack.c.b16 %v1334_v12, %v1333_v11  ;;  %v1546_v19 = vpack.c.b16 %v1545_v13, %v1544_v17 }
 0x1f9   : > { %v1340_v21 = vsel %vm1245_vm9, %v1335_v23, 0 }
 0x1fa   : > { %1349 = vmatpush.bf16.xpose.msra.mxu3 %v1340_v21 }
 0x201   : > { %2469 = vmatmul.msk.bf16.vlgmr.msra.gmra.mxu3 %vm1245_vm9, %v1330_v24  ;;  %v2704_v24 = vld [vmem:[%s3633_s9 + $0x18] sm:$0xff] }
 0x202   : > { %1558 = vmatpush.bf16.msrb.mxu3 %v1546_v19  ;;  %1669 = vmatpush.bf16.msrb.mxu1 %v2704_v24 }
 0x254   : > { %v1261_v25 = vpop.f32.mrf.mxu2 }
 0x255   : > { %v1357_v26 = vsel %vm1356_vm10, %v1261_v25, -inf }
 0x256   : > { %1358 = vmax.xlane.f32.xlu1 %v1357_v26 }
 0x25c   : > { %v1263_v27 = vpop.f32.mrf.mxu2 }
 0x25d   : > { %v1360_v33 = vsel %vm1356_vm10, %v1263_v27, -inf }
 0x264   : > { %v1291_v28 = vpop.f32.mrf.mxu3 }
 0x265   : > { %v1363_v36 = vsel %vm1356_vm10, %v1291_v28, -inf }
 0x26c   : > { %v1293_v31 = vpop.f32.mrf.mxu3 }
 0x26d   : > { %v1366_v39 = vsel %vm1356_vm10, %v1293_v31, -inf }
 0x274   : > { %v1321_v29 = vpop.f32.mrf.mxu2 }
 0x275   : > { %v1369_v30 = vsel %vm1356_vm10, %v1321_v29, -inf }
 0x276   : > { %1370 = vmax.xlane.f32.xlu2 %v1369_v30 }
 0x27c   : > { %v1323_v32 = vpop.f32.mrf.mxu2 }
 0x27d   : > { %v1372_v34 = vsel %vm1356_vm10, %v1323_v32, -inf }
 0x27e   : > { %1361 = vmax.xlane.f32.xlu2 %v1360_v33  ;;  %1373 = vmax.xlane.f32.xlu0 %v1372_v34 }
 0x284   : > { %v1351_v35 = vpop.f32.mrf.mxu3 }
 0x285   : > { %v1375_v37 = vsel %vm1356_vm10, %v1351_v35, -inf }
 0x286   : > { %1364 = vmax.xlane.f32.xlu2 %v1363_v36  ;;  %1376 = vmax.xlane.f32.xlu0 %v1375_v37 }
 0x28c   : > { %v1353_v38 = vpop.f32.mrf.mxu3 }
 0x28d   : > { %v1378_v40 = vsel %vm1356_vm10, %v1353_v38, -inf }
 0x28e   : > { %1367 = vmax.xlane.f32.xlu0 %v1366_v39  ;;  %1379 = vmax.xlane.f32.xlu1 %v1378_v40 }
 0x2c9   : > { %v1359_v41 = vpop.xlane.xlu1 %1358 }
 0x2ca   : > { %v1381_v42 = vsub.f32 %v1261_v25, %v1359_v41 }
 0x2cc   : > { %v1389_v43 = vmul.f32 1.442695, %v1381_v42 }
 0x2ce   : > { %2815 = vpow2.f32 %v1389_v43 }
 0x2d4   : > { %v3328_v44 = vpop.eup %2815 }
 0x2d5   : > { %v1405_v45 = vsel %vm1356_vm10, %v3328_v44, 0.0 }
 0x2d6   : > { %1406 = vadd.xlane.f32.xlu0 %v1405_v45 }
 0x2e9   : > { %v1371_v46 = vpop.xlane.xlu2 %1370 }
 0x2ea   : > { %v1385_v47 = vsub.f32 %v1321_v29, %v1371_v46 }
 0x2ec   : > { %v1397_v48 = vmul.f32 1.442695, %v1385_v47 }
 0x2ee   : > { %2817 = vpow2.f32 %v1397_v48 }
 0x2f1   : > { %v1362_v50 = vpop.xlane.xlu2 %1361  ;;  %v1374_v49 = vpop.xlane.xlu0 %1373 }
 0x2f2   : > { %v1382_v51 = vsub.f32 %v1263_v27, %v1362_v50  ;;  %v1386_v52 = vsub.f32 %v1323_v32, %v1374_v49 }
 0x2f4   : > { %v2818_v53 = vpop.eup %2817  ;;  %v1391_v54 = vmul.f32 1.442695, %v1382_v51  ;;  %v1399_v55 = vmul.f32 1.442695, %v1386_v52 }
 0x2f5   : > { %v1417_v56 = vsel %vm1356_vm10, %v2818_v53, 0.0 }
 0x2f6   : > { %2819 = vpow2.f32 %v1391_v54  ;;  %1418 = vadd.xlane.f32.xlu1 %v1417_v56 }
 0x2f7   : > { %2821 = vpow2.f32 %v1399_v55 }
 0x2f9   : > { %v1365_v57 = vpop.xlane.xlu2 %1364  ;;  %v1377_v58 = vpop.xlane.xlu0 %1376 }
 0x2fa   : > { %v1383_v59 = vsub.f32 %v1291_v28, %v1365_v57  ;;  %v1387_v60 = vsub.f32 %v1351_v35, %v1377_v58 }
 0x2fc   : > { %v2820_v61 = vpop.eup %2819  ;;  %v1393_v62 = vmul.f32 1.442695, %v1383_v59  ;;  %v1401_v63 = vmul.f32 1.442695, %v1387_v60 }
 0x2fd   : > { %v2822_v0 = vpop.eup %2821  ;;  %v1408_v1 = vsel %vm1356_vm10, %v2820_v61, 0.0 }
 0x2fe   : > { %2823 = vpow2.f32 %v1393_v62  ;;  %v1420_v2 = vsel %vm1356_vm10, %v2822_v0, 0.0  ;;  %1409 = vadd.xlane.f32.xlu1 %v1408_v1  ;;  %v2702_v1 = vld [vmem:[%s3633_s9 + $0x8] sm:$0xff] }
 0x2ff   : > { %2825 = vpow2.f32 %v1401_v63  ;;  %1421 = vadd.xlane.f32.xlu2 %v1420_v2  ;;  %v2703_v63 = vld [vmem:[%s3633_s9 + $0x10] sm:$0xff] }
 0x300   : > { %1670 = vmatpush.bf16.msrb.mxu1 %v2703_v63  ;;  %v2707_v2 = vld [vmem:[%s3633_s9 + $0x30] sm:$0xff]  ;;  %v2578_v63 = vld [vmem:[%s3637_s13 + $0x78] sm:$0xf0] }
 0x301   : > { %v1368_v3 = vpop.xlane.xlu0 %1367  ;;  %v1380_v4 = vpop.xlane.xlu1 %1379 }
 0x302   : > { %v1384_v5 = vsub.f32 %v1293_v31, %v1368_v3  ;;  %v1388_v6 = vsub.f32 %v1353_v38, %v1380_v4  ;;  %v2701_v3 = vld [vmem:[%s3633_s9] sm:$0xff]  ;;  %v2706_v4 = vld [vmem:[%s3633_s9 + $0x28] sm:$0xff] }
 0x304   : > { %v2824_v7 = vpop.eup %2823  ;;  %v1395_v8 = vmul.f32 1.442695, %v1384_v5  ;;  %v1403_v9 = vmul.f32 1.442695, %v1388_v6  ;;  %1671 = vmatpush.bf16.msrb.mxu1 %v2702_v1  ;;  %v2705_v5 = vld [vmem:[%s3633_s9 + $0x20] sm:$0xff] }
 0x305   : > { %v2826_v15 = vpop.eup %2825  ;;  %v1411_v16 = vsel %vm1356_vm10, %v2824_v7, 0.0  ;;  %v2568_v1 = vld [vmem:[%s3637_s13 + $0x60] sm:$0xf] }
 0x306   : > { %2827 = vpow2.f32 %v1395_v8  ;;  %v1423_v11 = vsel %vm1356_vm10, %v2826_v15, 0.0  ;;  %1412 = vadd.xlane.f32.xlu1 %v1411_v16 }
 0x307   : > { %2829 = vpow2.f32 %v1403_v9  ;;  %1424 = vadd.xlane.f32.xlu2 %v1423_v11 }
 0x308   : > { %1672 = vmatpush.bf16.msrb.mxu1 %v2701_v3  ;;  %v2721_v3 = vld [vmem:[%s3637_s13 + $0x64] sm:$0xf] }
 0x30c   : > { %v2828_v12 = vpop.eup %2827 }
 0x30d   : > { %v2830_v13 = vpop.eup %2829  ;;  %v1414_v14 = vsel %vm1356_vm10, %v2828_v12, 0.0 }
 0x30e   : > { %v1426_v17 = vsel %vm1356_vm10, %v2830_v13, 0.0 }
 0x30f   : > { %1415 = vadd.xlane.f32.xlu2 %v1414_v14  ;;  %1427 = vadd.xlane.f32.xlu0 %v1426_v17 }
 0x349   : > { %v1407_v23 = vpop.xlane.xlu0 %1406 }
 0x34a   : > { %2831 = vrcp.f32 %v1407_v23 }
 0x350   : > { %v2832_v21 = vpop.eup %2831 }
 0x351   : > { %v1437_v25 = vmul.f32 %v2832_v21, %v3328_v44 }
 0x353   : > { %v1445_v29 = vpack.c.bf16 %v1437_v25, %v1437_v25  ;;  %v2863_v25 = vld [vmem:[%s3076_s18] sm:$0xff] }
 0x355   : > { %v1455_v37 = vunpack.c.l.b16 %v1445_v29 }
 0x369   : > { %v1419_v18 = vpop.xlane.xlu1 %1418 }
 0x36a   : > { %2833 = vrcp.f32 %v1419_v18 }
 0x370   : > { %v2834_v22 = vpop.eup %2833 }
 0x371   : > { %v1410_v19 = vpop.xlane.xlu1 %1409  ;;  %v1441_v26 = vmul.f32 %v2834_v22, %v2818_v53 }
 0x372   : > { %v1422_v20 = vpop.xlane.xlu2 %1421  ;;  %2835 = vrcp.f32 %v1410_v19  ;;  %v2793_v19 = vld [vmem:[%s3634_s10] ss:$0 sm:$0xff] }
 0x373   : > { %2837 = vrcp.f32 %v1422_v20  ;;  %v1449_v31 = vpack.c.bf16 %v1441_v26, %v1441_v26 }
 0x375   : > { %v1511_v39 = vunpack.c.l.b16 %v1449_v31 }
 0x378   : > { %v2836_v27 = vpop.eup %2835 }
 0x379   : > { %v2838_v28 = vpop.eup %2837  ;;  %v1438_v30 = vmul.f32 %v2836_v27, %v2820_v61  ;;  %v1413_v34 = vpop.xlane.xlu1 %1412 }
 0x37a   : > { %v1442_v32 = vmul.f32 %v2838_v28, %v2822_v0  ;;  %v1425_v33 = vpop.xlane.xlu2 %1424  ;;  %2839 = vrcp.f32 %v1413_v34  ;;  %v2708_v0 = vld [vmem:[%s3633_s9 + $0x38] sm:$0xff] }
 0x37b   : > { %v1446_v35 = vpack.c.bf16 %v1438_v30, %v1438_v30  ;;  %2841 = vrcp.f32 %v1425_v33  ;;  %1620 = vmatpush.bf16.msrb.mxu0 %v2708_v0  ;;  %v2864_v30 = vld [vmem:[%s3076_s18 + $0x8] sm:$0xff] }
 0x37c   : > { %v1450_v36 = vpack.c.bf16 %v1442_v32, %v1442_v32 }
 0x37d   : > { %v1456_v38 = vunpack.c.l.b16 %v1446_v35 }
 0x37e   : > { %v1512_v40 = vunpack.c.l.b16 %v1450_v36  ;;  %v2865_v36 = vld [vmem:[%s3076_s18 + $0x10] sm:$0xff] }
 0x37f   : > { %v1457_v41 = vpack.c.b16 %v1456_v38, %v1455_v37  ;;  %1621 = vmatpush.bf16.msrb.mxu0 %v2707_v2  ;;  %v2722_v2 = vld [vmem:[%s3637_s13 + $0x64] sm:$0xf0] }
 0x380   : > { %v1513_v42 = vpack.c.b16 %v1512_v40, %v1511_v39  ;;  %v2840_v45 = vpop.eup %2839 }
 0x381   : > { %2470 = vmatmul.msk.bf16.vlgmr.msra.gmra.mxu0 %vm1356_vm10, %v1457_v41  ;;  %v2842_v46 = vpop.eup %2841  ;;  %v1439_v47 = vmul.f32 %v2840_v45, %v2824_v7 }
 0x382   : > { %v1416_v43 = vpop.xlane.xlu2 %1415  ;;  %v1428_v44 = vpop.xlane.xlu0 %1427  ;;  %2472 = vmatmul.msk.bf16.vlgmr.msrb.gmra.mxu2 %vm1356_vm10, %v1513_v42  ;;  %v1443_v48 = vmul.f32 %v2842_v46, %v2826_v15  ;;  %v2866_v42 = vld [vmem:[%s3076_s18 + $0x18] sm:$0xff] }
 0x383   : > { %2843 = vrcp.f32 %v1416_v43  ;;  %v1447_v51 = vpack.c.bf16 %v1439_v47, %v1439_v47  ;;  %1622 = vmatpush.bf16.msrb.mxu0 %v2706_v4  ;;  %v2569_v4 = vor.u32 %v2722_v2, %v2568_v1 }
 0x384   : > { %2845 = vrcp.f32 %v1428_v44  ;;  %v1451_v53 = vpack.c.bf16 %v1443_v48, %v1443_v48 }
 0x385   : > { %v1483_v57 = vunpack.c.l.b16 %v1447_v51 }
 0x386   : > { %v1539_v59 = vunpack.c.l.b16 %v1451_v53 }
 0x387   : > { %1623 = vmatpush.bf16.msrb.mxu0 %v2705_v5  ;;  %v2570_v5 = vld [vmem:[%s3637_s13 + $0x68] sm:$0xf0] }
 0x389   : > { %v2844_v50 = vpop.eup %2843 }
 0x38a   : > { %v2846_v49 = vpop.eup %2845  ;;  %v1440_v52 = vmul.f32 %v2844_v50, %v2828_v12 }
 0x38b   : > { %v1444_v54 = vmul.f32 %v2846_v49, %v2830_v13 }
 0x38c   : > { %v1448_v55 = vpack.c.bf16 %v1440_v52, %v1440_v52 }
 0x38d   : > { %v1452_v56 = vpack.c.bf16 %v1444_v54, %v1444_v54 }
 0x38e   : > { %v1484_v58 = vunpack.c.l.b16 %v1448_v55 }
 0x38f   : > { %v1540_v60 = vunpack.c.l.b16 %v1452_v56 }
 0x390   : > { %v1485_v61 = vpack.c.b16 %v1484_v58, %v1483_v57 }
 0x391   : > { %v1541_v62 = vpack.c.b16 %v1540_v60, %v1539_v59  ;;  %v2576_v60 = vld [vmem:[%s3637_s13 + $0x70] sm:$0xf] }
 0x392   : > { %2471 = vmatmul.msk.bf16.vlgmr.msra.gmra.mxu1 %vm1356_vm10, %v1485_v61  ;;  %v2724_v61 = vld [vmem:[%s3637_s13 + $0x74] sm:$0xf0] }
 0x393   : > { %2473 = vmatmul.msk.bf16.vlgmr.msrb.gmra.mxu3 %vm1356_vm10, %v1541_v62  ;;  %v2723_v62 = vld [vmem:[%s3637_s13 + $0x74] sm:$0xf] }
 0x394   : > { %v2581_v0 = vor.u32 %v2723_v62, %v2578_v63 }
 0x396   : > { %1927 = vmatpush.bf16.msra.mxu3 %v2581_v0 }
 0x3fe   : > { %v1476_v6 = vpop.f32.mrf.mxu0 }
 0x405   : > { %v1532_v7 = vpop.f32.mrf.mxu2 }
 0x406   : > { %v1478_v8 = vpop.f32.mrf.mxu0 }
 0x407   : > { %v1565_v9 = vpack.c.bf16 %v1478_v8, %v1476_v6  ;;  %v2573_v6 = vor.u32 %v2721_v3, %v2570_v5  ;;  %v2720_v8 = vld [vmem:[%s3637_s13 + $0x54] sm:$0xf0] }
 0x409   : > { %2516 = vmatmul.msk.bf16.vlgmr.msrb.gmra.mxu1 %vm1245_vm9, %v1565_v9  ;;  %1928 = vmatpush.bf16.msra.mxu3 %v2573_v6  ;;  %v2719_v9 = vld [vmem:[%s3637_s13 + $0x54] sm:$0xf] }
 0x40d   : > { %v1534_v15 = vpop.f32.mrf.mxu2 }
 0x40e   : > { %v1575_v16 = vpack.c.bf16 %v1534_v15, %v1532_v7  ;;  %v2560_v7 = vld [vmem:[%s3637_s13 + $0x50] sm:$0xf] }
 0x40f   : > { %v1504_v11 = vpop.f32.mrf.mxu1  ;;  %v2561_v15 = vor.u32 %v2720_v8, %v2560_v7 }
 0x410   : > { %2498 = vmatmul.msk.bf16.vlgmr.msrb.gmra.mxu0 %vm1245_vm9, %v1575_v16  ;;  %v2562_v16 = vld [vmem:[%s3637_s13 + $0x58] sm:$0xf0] }
 0x416   : > { %v1560_v12 = vpop.f32.mrf.mxu3 }
 0x417   : > { %v1506_v13 = vpop.f32.mrf.mxu1 }
 0x418   : > { %v1566_v14 = vpack.c.bf16 %v1506_v13, %v1504_v11  ;;  %v2565_v11 = vor.u32 %v2719_v9, %v2562_v16  ;;  %v2718_v13 = vld [vmem:[%s3637_s13 + $0x44] sm:$0xf0] }
 0x41a   : > { %2517 = vmatmul.msk.bf16.gmra.mxu1 %vm1245_vm9, %v1566_v14  ;;  %1929 = vmatpush.bf16.msra.mxu3 %v2565_v11  ;;  %v2717_v14 = vld [vmem:[%s3637_s13 + $0x44] sm:$0xf] }
 0x41e   : > { %v1562_v17 = vpop.f32.mrf.mxu3 }
 0x41f   : > { %v1576_v23 = vpack.c.bf16 %v1562_v17, %v1560_v12  ;;  %v2552_v12 = vld [vmem:[%s3637_s13 + $0x40] sm:$0xf] }
 0x420   : > { %v2553_v17 = vor.u32 %v2718_v13, %v2552_v12 }
 0x421   : > { %2499 = vmatmul.msk.bf16.gmra.mxu0 %vm1245_vm9, %v1576_v23  ;;  %v2554_v23 = vld [vmem:[%s3637_s13 + $0x48] sm:$0xf0] }
 0x486   : > { %v1674_v18 = vpop.f32.mrf.mxu1 }
 0x48d   : > { %v1625_v21 = vpop.f32.mrf.mxu0 }
 0x48e   : > { %v1675_v20 = vadd.f32 %v1674_v18, %v1625_v21  ;;  %v1676_v24 = vpop.f32.mrf.mxu1  ;;  %v2557_v18 = vor.u32 %v2717_v14, %v2554_v23  ;;  %v2716_v21 = vld [vmem:[%s3637_s13 + $0x34] sm:$0xf0] }
 0x490   : > { %v1688_v22 = vadd.f32 %v2793_v19, %v1675_v20  ;;  %1930 = vmatpush.bf16.msra.mxu3 %v2557_v18  ;;  %v2715_v20 = vld [vmem:[%s3637_s13 + $0x34] sm:$0xf] }
 0x492   : > { %v3376_v26 = vadd.f32 %v2863_v25, %v1688_v22 }
 0x494   : > { %1698 = vadd.xlane.f32.xlu0 %v3376_v26 }
 0x495   : > { %v1627_v27 = vpop.f32.mrf.mxu0 }
 0x496   : > { %v1677_v28 = vadd.f32 %v1676_v24, %v1627_v27  ;;  %v2546_v24 = vld [vmem:[%s3637_s13 + $0x38] sm:$0xf0] }
 0x497   : > { %v1679_v32 = vpop.f32.mrf.mxu1  ;;  %v2549_v27 = vor.u32 %v2715_v20, %v2546_v24  ;;  %v2732_v20 = vld [vmem:[%s3639_s15 + $0x38] sm:$0xff]  ;;  %v2794_v24 = vld [vmem:[%s3635_s11] ss:$0 sm:$0xff] }
 0x498   : > { %v1689_v29 = vadd.f32 %v2793_v19, %v1677_v28  ;;  %2090 = vmatpush.bf16.msra.mxu0 %v2732_v20 }
 0x499   : > { %1931 = vmatpush.bf16.msra.mxu3 %v2549_v27 }
 0x49a   : > { %v3380_v31 = vadd.f32 %v2864_v30, %v1689_v29  ;;  %v2536_v29 = vld [vmem:[%s3637_s13 + $0x20] sm:$0xf]  ;;  %v2714_v30 = vld [vmem:[%s3637_s13 + $0x24] sm:$0xf0] }
 0x49c   : > { %1700 = vadd.xlane.f32.xlu1 %v3380_v31 }
 0x49e   : > { %v1630_v33 = vpop.f32.mrf.mxu0 }
 0x49f   : > { %v1680_v34 = vadd.f32 %v1679_v32, %v1630_v33  ;;  %v1681_v38 = vpop.f32.mrf.mxu1  ;;  %v2713_v32 = vld [vmem:[%s3637_s13 + $0x24] sm:$0xf]  ;;  %v2537_v33 = vor.u32 %v2714_v30, %v2536_v29  ;;  %v2739_v29 = vld [vmem:[%s3639_s15 + $0x70] sm:$0xff] }
 0x4a1   : > { %v1690_v35 = vadd.f32 %v2793_v19, %v1680_v34  ;;  %v2538_v34 = vld [vmem:[%s3637_s13 + $0x28] sm:$0xf0] }
 0x4a3   : > { %v3384_v37 = vadd.f32 %v2865_v36, %v1690_v35  ;;  %v2528_v35 = vld [vmem:[%s3637_s13 + $0x10] sm:$0xf]  ;;  %v2712_v36 = vld [vmem:[%s3637_s13 + $0x14] sm:$0xf0] }
 0x4a5   : > { %1702 = vadd.xlane.f32.xlu2 %v3384_v37 }
 0x4a6   : > { %v1632_v39 = vpop.f32.mrf.mxu0 }
 0x4a7   : > { %v1682_v40 = vadd.f32 %v1681_v38, %v1632_v39  ;;  %v2541_v38 = vor.u32 %v2713_v32, %v2538_v34  ;;  %v2711_v39 = vld [vmem:[%s3637_s13 + $0x14] sm:$0xf] }
 0x4a9   : > { %v1691_v41 = vadd.f32 %v2793_v19, %v1682_v40  ;;  %v2544_v19 = vld [vmem:[%s3637_s13 + $0x30] sm:$0xf]  ;;  %v2530_v40 = vld [vmem:[%s3637_s13 + $0x18] sm:$0xf0]  ;;  %1932 = vmatpush.bf16.msra.mxu3 %v2541_v38 }
 0x4aa   : > { %v2545_v22 = vor.u32 %v2716_v21, %v2544_v19 }
 0x4ab   : > { %v3388_v43 = vadd.f32 %v2866_v42, %v1691_v41  ;;  %v2529_v41 = vor.u32 %v2712_v36, %v2528_v35  ;;  %v2533_v42 = vor.u32 %v2711_v39, %v2530_v40  ;;  %v2730_v40 = vld [vmem:[%s3639_s15 + $0x28] sm:$0xff] }
 0x4ad   : > { %1704 = vadd.xlane.f32.xlu0 %v3388_v43  ;;  %1933 = vmatpush.bf16.msra.mxu3 %v2533_v42 }
 0x507   : > { %v1699_v44 = vpop.xlane.xlu0 %1698 }
 0x508   : > { %v1706_v45 = vmul.f32 %v1699_v44, %v3082_v10  ;;  %v2520_v44 = vld [vmem:[%s3637_s13] sm:$0xf] }
 0x50a   : > { %v3393_v46 = vsub.f32 %v3376_v26, %v1706_v45  ;;  %v2710_v45 = vld [vmem:[%s3637_s13 + $0x4] sm:$0xf0] }
 0x50c   : > { %v1714_v47 = vmul.f32 %v3393_v46, %v3393_v46  ;;  %v1789_v34 = vmul.f32 %v2794_v24, %v3393_v46  ;;  %v2795_v46 = vld [vmem:[%s3636_s12] ss:$0 sm:$0xff] }
 0x50e   : > { %1718 = vadd.xlane.f32.xlu1 %v1714_v47  ;;  %v2709_v47 = vld [vmem:[%s3637_s13 + $0x4] sm:$0xf] }
 0x50f   : > { %v1701_v48 = vpop.xlane.xlu1 %1700 }
 0x510   : > { %v1707_v50 = vmul.f32 %v1701_v48, %v3082_v10  ;;  %v2522_v48 = vld [vmem:[%s3637_s13 + $0x8] sm:$0xf0] }
 0x512   : > { %v3399_v49 = vsub.f32 %v3380_v31, %v1707_v50 }
 0x514   : > { %v1715_v51 = vmul.f32 %v3399_v49, %v3399_v49  ;;  %v1790_v38 = vmul.f32 %v2794_v24, %v3399_v49 }
 0x516   : > { %1720 = vadd.xlane.f32.xlu2 %v1715_v51 }
 0x518   : > { %v1703_v52 = vpop.xlane.xlu2 %1702 }
 0x519   : > { %v1708_v53 = vmul.f32 %v1703_v52, %v3082_v10 }
 0x51b   : > { %v3405_v54 = vsub.f32 %v3384_v37, %v1708_v53  ;;  %v2521_v53 = vor.u32 %v2710_v45, %v2520_v44 }
 0x51d   : > { %v1716_v55 = vmul.f32 %v3405_v54, %v3405_v54 }
 0x51f   : > { %1722 = vadd.xlane.f32.xlu0 %v1716_v55 }
 0x520   : > { %v1705_v56 = vpop.xlane.xlu0 %1704 }
 0x521   : > { %v1709_v57 = vmul.f32 %v1705_v56, %v3082_v10  ;;  %v2577_v10 = vor.u32 %v2724_v61, %v2576_v60  ;;  %v2525_v56 = vor.u32 %v2709_v47, %v2522_v48 }
 0x523   : > { %v3411_v58 = vsub.f32 %v3388_v43, %v1709_v57  ;;  %1908 = vmatpush.bf16.msra.mxu2 %v2577_v10  ;;  %1934 = vmatpush.bf16.msra.mxu3 %v2525_v56 }
 0x525   : > { %v1717_v59 = vmul.f32 %v3411_v58, %v3411_v58 }
 0x527   : > { %1724 = vadd.xlane.f32.xlu1 %v1717_v59  ;;  %1909 = vmatpush.bf16.msra.mxu2 %v2569_v4 }
 0x52b   : > { %1910 = vmatpush.bf16.msra.mxu2 %v2561_v15 }
 0x52f   : > { %1911 = vmatpush.bf16.msra.mxu2 %v2553_v17 }
 0x533   : > { %1912 = vmatpush.bf16.msra.mxu2 %v2545_v22  ;;  %v2740_v22 = vld [vmem:[%s3639_s15 + $0x78] sm:$0xff] }
 0x534   : > { %2109 = vmatpush.bf16.msra.mxu1 %v2740_v22 }
 0x537   : > { %1913 = vmatpush.bf16.msra.mxu2 %v2537_v33 }
 0x538   : > { %2110 = vmatpush.bf16.msra.mxu1 %v2739_v29 }
 0x53b   : > { %1914 = vmatpush.bf16.msra.mxu2 %v2529_v41  ;;  %v2738_v41 = vld [vmem:[%s3639_s15 + $0x68] sm:$0xff] }
 0x53c   : > { %2111 = vmatpush.bf16.msra.mxu1 %v2738_v41 }
 0x53f   : > { %1915 = vmatpush.bf16.msra.mxu2 %v2521_v53 }
 0x581   : > { %v1719_v25 = vpop.xlane.xlu1 %1718 }
 0x582   : > { %v1726_v28 = vmul.f32 0.007874016, %v1719_v25 }
 0x584   : > { %2847 = vrsqrt.f32 %v1726_v28  ;;  %vm1737_vm11 = vcmp.eq.f32.partialorder %v1726_v28, inf  ;;  %v1740_v3 = vand.u32 2147483648, %v1726_v28  ;;  %vm1739_vm12 = vcmp.eq.f32.partialorder %v1726_v28, 0.0 }
 0x589   : > { %v1721_v50 = vpop.xlane.xlu2 %1720 }
 0x58a   : > { %v2848_v51 = vpop.eup %2847  ;;  %v1727_v52 = vmul.f32 0.007874016, %v1721_v50 }
 0x58b   : > { %v1731_v55 = vmul.f32 %v2848_v51, %v1726_v28 }
 0x58c   : > { %2849 = vrsqrt.f32 %v1727_v52  ;;  %vm1749_vm13 = vcmp.eq.f32.partialorder %v1727_v52, inf  ;;  %v1752_v14 = vand.u32 2147483648, %v1727_v52  ;;  %vm1751_vm14 = vcmp.eq.f32.partialorder %v1727_v52, 0.0 }
 0x58d   : > { %v1732_v57 = vmul.f32 %v2848_v51, %v1731_v55 }
 0x58f   : > { %v1733_v59 = vmul.f32 0.5, %v1732_v57 }
 0x591   : > { %v1734_v60 = vsub.f32 1.5, %v1733_v59 }
 0x592   : > { %v2850_v61 = vpop.eup %2849  ;;  %v1723_v62 = vpop.xlane.xlu0 %1722 }
 0x593   : > { %v1735_v10 = vmul.f32 %v2848_v51, %v1734_v60  ;;  %v1743_v63 = vmul.f32 %v2850_v61, %v1727_v52  ;;  %v1728_v0 = vmul.f32 0.007874016, %v1723_v62  ;;  %v2729_v51 = vld [vmem:[%s3639_s15 + $0x20] sm:$0xff] }
 0x595   : > { %v1736_v1 = vmul.f32 %v1735_v10, %v1726_v28  ;;  %v1744_v2 = vmul.f32 %v2850_v61, %v1743_v63  ;;  %2851 = vrsqrt.f32 %v1728_v0  ;;  %vm1761_vm15 = vcmp.eq.f32.partialorder %v1728_v0, inf }
 0x596   : > { %v1764_v39 = vand.u32 2147483648, %v1728_v0  ;;  %vm1763_vm0 = vcmp.eq.f32.partialorder %v1728_v0, 0.0 }
 0x597   : > { %v1745_v4 = vmul.f32 0.5, %v1744_v2  ;;  %v1738_v5 = vsel %vm1737_vm11, %v1726_v28, %v1736_v1  ;;  %v2731_v28 = vld [vmem:[%s3639_s15 + $0x30] sm:$0xff]  ;;  %v1791_v1 = vmul.f32 %v2794_v24, %v3405_v54  ;;  %v1792_v2 = vmul.f32 %v2794_v24, %v3411_v58 }
 0x598   : > { %v1741_v6 = vsel %vm1739_vm12, %v1740_v3, %v1738_v5  ;;  %2091 = vmatpush.bf16.msra.mxu0 %v2731_v28  ;;  %v2727_v54 = vld [vmem:[%s3639_s15 + $0x10] sm:$0xff] }
 0x599   : > { %v1746_v7 = vsub.f32 1.5, %v1745_v4  ;;  %v1778_v11 = vadd.f32 1e-06, %v1741_v6  ;;  %v2735_v58 = vld [vmem:[%s3639_s15 + $0x50] sm:$0xff] }
 0x59a   : > { %v1725_v8 = vpop.xlane.xlu1 %1724 }
 0x59b   : > { %v2852_v9 = vpop.eup %2851  ;;  %v1747_v15 = vmul.f32 %v2850_v61, %v1746_v7  ;;  %v3511_v16 = vmul.f32 0.007874016, %v1725_v8 }
 0x59c   : > { %v1755_v12 = vmul.f32 %v2852_v9, %v1728_v0  ;;  %2092 = vmatpush.bf16.msra.mxu0 %v2730_v40 }
 0x59d   : > { %v1748_v13 = vmul.f32 %v1747_v15, %v1727_v52  ;;  %2853 = vrsqrt.f32 %v3511_v16  ;;  %vm1773_vm1 = vcmp.eq.f32.partialorder %v3511_v16, inf  ;;  %v1776_v61 = vand.u32 2147483648, %v3511_v16  ;;  %v2736_v15 = vld [vmem:[%s3639_s15 + $0x58] sm:$0xff] }
 0x59e   : > { %v1756_v17 = vmul.f32 %v2852_v9, %v1755_v12  ;;  %2855 = vrcp.f32 %v1778_v11  ;;  %vm1775_vm2 = vcmp.eq.f32.partialorder %v3511_v16, 0.0  ;;  %v2734_v11 = vld [vmem:[%s3639_s15 + $0x48] sm:$0xff]  ;;  %v2725_v12 = vld [vmem:[%s3639_s15] sm:$0xff] }
 0x59f   : > { %v1750_v23 = vsel %vm1749_vm13, %v1727_v52, %v1748_v13  ;;  %v2737_v52 = vld [vmem:[%s3639_s15 + $0x60] sm:$0xff] }
 0x5a0   : > { %v1753_v18 = vsel %vm1751_vm14, %v1752_v14, %v1750_v23  ;;  %v1757_v19 = vmul.f32 0.5, %v1756_v17  ;;  %2093 = vmatpush.bf16.msra.mxu0 %v2729_v51  ;;  %2112 = vmatpush.bf16.msra.mxu1 %v2737_v52  ;;  %v2733_v13 = vld [vmem:[%s3639_s15 + $0x40] sm:$0xff] }
 0x5a1   : > { %v1779_v21 = vadd.f32 1e-06, %v1753_v18  ;;  %v1822_v14 = vld [vmem:[%s3638_s14] sm:$0x3] }
 0x5a2   : > { %v1758_v25 = vsub.f32 1.5, %v1757_v19  ;;  %v1824_v18 = vperm.slane %v1822_v14, 0  ;;  %v1825_v19 = vperm.slane %v1822_v14, 1  ;;  %v2796_v51 = vld [vmem:[%s3640_s16] ss:$0 sm:$0xff] }
 0x5a3   : > { %v2854_v27 = vpop.eup %2853  ;;  %2857 = vrcp.f32 %v1779_v21 }
 0x5a4   : > { %v1767_v30 = vmul.f32 %v2854_v27, %v3511_v16  ;;  %v1759_v32 = vmul.f32 %v2852_v9, %v1758_v25  ;;  %v2856_v33 = vpop.eup %2855  ;;  %v2728_v9 = vld [vmem:[%s3639_s15 + $0x18] sm:$0xff]  ;;  %2113 = vmatpush.bf16.msra.mxu1 %v2736_v15 }
 0x5a5   : > { %v1793_v42 = vmul.f32 %v2856_v33, %v1789_v34  ;;  %2094 = vmatpush.bf16.msra.mxu0 %v2728_v9 }
 0x5a6   : > { %v1760_v35 = vmul.f32 %v1759_v32, %v1728_v0  ;;  %v1768_v36 = vmul.f32 %v2854_v27, %v1767_v30 }
 0x5a7   : > { %v1800_v53 = vadd.f32 %v2795_v46, %v1793_v42 }
 0x5a8   : > { %v1762_v44 = vsel %vm1761_vm15, %v1728_v0, %v1760_v35  ;;  %v1769_v49 = vmul.f32 0.5, %v1768_v36  ;;  %2114 = vmatpush.bf16.msra.mxu1 %v2735_v58 }
 0x5a9   : > { %v2858_v45 = vpop.eup %2857  ;;  %v1765_v47 = vsel %vm1763_vm0, %v1764_v39, %v1762_v44  ;;  %2095 = vmatpush.bf16.msra.mxu0 %v2727_v54 }
 0x5aa   : > { %v1794_v48 = vmul.f32 %v2858_v45, %v1790_v38  ;;  %v1770_v50 = vsub.f32 1.5, %v1769_v49  ;;  %v1780_v57 = vadd.f32 1e-06, %v1765_v47 }
 0x5ac   : > { %v1801_v55 = vadd.f32 %v2795_v46, %v1794_v48  ;;  %v1771_v56 = vmul.f32 %v2854_v27, %v1770_v50  ;;  %2859 = vrcp.f32 %v1780_v57  ;;  %2115 = vmatpush.bf16.msra.mxu1 %v2734_v11 }
 0x5ae   : > { %v1804_v59 = vpack.c.bf16 %v1801_v55, %v1800_v53  ;;  %v1772_v60 = vmul.f32 %v1771_v56, %v3511_v16 }
 0x5b0   : > { %1916 = vmatmul.bf16.vlgmr.msra.gmra.mxu2 %v1804_v59  ;;  %1935 = vmatmul.bf16.vlgmr.msra.gmra.mxu3 %v1804_v59  ;;  %v1774_v62 = vsel %vm1773_vm1, %v3511_v16, %v1772_v60  ;;  %v2726_v16 = vld [vmem:[%s3639_s15 + $0x8] sm:$0xff] }
 0x5b1   : > { %v1777_v10 = vsel %vm1775_vm2, %v1776_v61, %v1774_v62  ;;  %2096 = vmatpush.bf16.msra.mxu0 %v2726_v16  ;;  %2116 = vmatpush.bf16.msra.mxu1 %v2733_v13 }
 0x5b2   : > { %v1781_v63 = vadd.f32 1e-06, %v1777_v10  ;;  %v2860_v0 = vpop.eup %2859 }
 0x5b3   : > { %v1795_v3 = vmul.f32 %v2860_v0, %v1791_v1 }
 0x5b4   : > { %2861 = vrcp.f32 %v1781_v63 }
 0x5b5   : > { %v1802_v6 = vadd.f32 %v2795_v46, %v1795_v3  ;;  %2097 = vmatpush.bf16.msra.mxu0 %v2725_v12 }
 0x5ba   : > { %v2862_v4 = vpop.eup %2861 }
 0x5bb   : > { %v1796_v5 = vmul.f32 %v2862_v4, %v1792_v2 }
 0x5bd   : > { %v1803_v7 = vadd.f32 %v2795_v46, %v1796_v5 }
 0x5bf   : > { %v1805_v8 = vpack.c.bf16 %v1803_v7, %v1802_v6 }
 0x5c1   : > { %1921 = vmatmul.bf16.gmra.mxu2 %v1805_v8  ;;  %1940 = vmatmul.bf16.gmra.mxu3 %v1805_v8 }
 0x633   : > { %v1917_v17 = vpop.f32.mrf.mxu2  ;;  %v1936_v23 = vpop.f32.mrf.mxu3 }
 0x634   : > { %v1918_v21 = vadd.f32 %v1917_v17, %v1824_v18  ;;  %v1937_v20 = vadd.f32 %v1936_v23, %v1825_v19 }
 0x636   : > { %v1946_v28 = vmax.f32 %v1918_v21, 0.0  ;;  %v1947_v29 = vmax.f32 %v1937_v20, 0.0 }
 0x63b   : > { %v1919_v22 = vpop.f32.mrf.mxu2  ;;  %v1938_v24 = vpop.f32.mrf.mxu3 }
 0x63c   : > { %v1920_v25 = vadd.f32 %v1919_v22, %v1824_v18  ;;  %v1939_v27 = vadd.f32 %v1938_v24, %v1825_v19 }
 0x63e   : > { %v1948_v30 = vmax.f32 %v1920_v25, 0.0  ;;  %v1949_v32 = vmax.f32 %v1939_v27, 0.0 }
 0x640   : > { %v1954_v33 = vpack.c.bf16 %v1948_v30, %v1946_v28  ;;  %v1955_v34 = vpack.c.bf16 %v1949_v32, %v1947_v29 }
 0x642   : > { %2098 = vmatmul.bf16.vlgmr.msra.gmra.mxu0 %v1954_v33  ;;  %2117 = vmatmul.bf16.vlgmr.msra.gmra.mxu1 %v1955_v34 }
 0x644   : > { %v1922_v35 = vpop.f32.mrf.mxu2  ;;  %v1941_v36 = vpop.f32.mrf.mxu3 }
 0x645   : > { %v1923_v38 = vadd.f32 %v1922_v35, %v1824_v18  ;;  %v1942_v39 = vadd.f32 %v1941_v36, %v1825_v19 }
 0x647   : > { %v1950_v44 = vmax.f32 %v1923_v38, 0.0  ;;  %v1951_v49 = vmax.f32 %v1942_v39, 0.0 }
 0x64c   : > { %v1924_v40 = vpop.f32.mrf.mxu2  ;;  %v1943_v41 = vpop.f32.mrf.mxu3 }
 0x64d   : > { %v1925_v42 = vadd.f32 %v1924_v40, %v1824_v18  ;;  %v1944_v46 = vadd.f32 %v1943_v41, %v1825_v19 }
 0x64f   : > { %v1952_v45 = vmax.f32 %v1925_v42, 0.0  ;;  %v1953_v47 = vmax.f32 %v1944_v46, 0.0 }
 0x651   : > { %v1956_v48 = vpack.c.bf16 %v1952_v45, %v1950_v44  ;;  %v1957_v50 = vpack.c.bf16 %v1953_v47, %v1951_v49 }
 0x653   : > { %2103 = vmatmul.bf16.gmra.mxu0 %v1956_v48  ;;  %2122 = vmatmul.bf16.gmra.mxu1 %v1957_v50 }
 0x6bf   : > { %v2099_v52 = vpop.f32.mrf.mxu0  ;;  %v2118_v53 = vpop.f32.mrf.mxu1 }
 0x6c0   : > { %v2100_v55 = vadd.f32 %v2796_v51, %v2099_v52 }
 0x6c2   : > { %v2119_v56 = vadd.f32 %v2118_v53, %v2100_v55 }
 0x6c4   : > { %v2128_v57 = vadd.f32 %v2119_v56, %v3376_v26 }
 0x6c6   : > { %2132 = vst [vmem:[%s544_s19] sm:$0xff] %v2128_v57 }
 0x6c7   : > { %v2101_v59 = vpop.f32.mrf.mxu0  ;;  %v2120_v60 = vpop.f32.mrf.mxu1 }
 0x6c8   : > { %v2102_v61 = vadd.f32 %v2796_v51, %v2101_v59 }
 0x6ca   : > { %v2121_v62 = vadd.f32 %v2120_v60, %v2102_v61 }
 0x6cc   : > { %v2129_v10 = vadd.f32 %v2121_v62, %v3380_v31 }
 0x6ce   : > { %2133 = vst [vmem:[%s544_s19 + $0x8] sm:$0xff] %v2129_v10 }
 0x6d0   : > { %v2104_v63 = vpop.f32.mrf.mxu0  ;;  %v2123_v0 = vpop.f32.mrf.mxu1 }
 0x6d1   : > { %v2105_v1 = vadd.f32 %v2796_v51, %v2104_v63 }
 0x6d3   : > { %v2124_v2 = vadd.f32 %v2123_v0, %v2105_v1 }
 0x6d5   : > { %v2130_v3 = vadd.f32 %v2124_v2, %v3384_v37 }
 0x6d7   : > { %2134 = vst [vmem:[%s544_s19 + $0x10] sm:$0xff] %v2130_v3 }
 0x6d8   : > { %v2106_v26 = vpop.f32.mrf.mxu0  ;;  %v2125_v5 = vpop.f32.mrf.mxu1 }
 0x6d9   : > { %v2107_v4 = vadd.f32 %v2796_v51, %v2106_v26 }
 0x6db   : > { %v2126_v31 = vadd.f32 %v2125_v5, %v2107_v4 }
 0x6dd   : > { %v2131_v6 = vadd.f32 %v2126_v31, %v3388_v43 }
 0x6df   : > { %2135 = vst [vmem:[%s544_s19 + $0x18] sm:$0xff] %v2131_v6 }
 0x6e0   : > { %2894 = shalt.err (!%p2891_p3)
}
 0x6e1   : > { %s2932_s29 = smov 128   ;;  %s2933_s19 = smov 8  }
 0x6e2   : > { %2743 = dma.vmem_to_hbm [thread:$0]  (%p3062_p5), %s2151_s24, 512, %s2153_s20, %s2137_s28, %s2932_s29, %s2932_s29, %s2933_s19  }
 0x6e3 PF: > { %s3662_s0 = sld [smem:[#allocation5_spill]]  ;;  %p2749_p4 = scmp.ge.s32.totalorder %s2929_s27, 2 }
 0x6e5   : > { %p2746_p7 = pnand %p2749_p4, %p3066_p6 }
 0x6e7   : > { %p2747_p8 = pneg %p2746_p7 }
 0x6e9   : > { %s2167_s23 = sand.u32 1, %s3662_s0  }
 0x6ea   : > { %s2168_s3 = scalar_lea.sflag [#allocation3], %s2167_s23 }
 0x6eb   : > { %2912 = dma.done.wait (%p2747_p8), %s2168_s3, 512  }
 0x6ec   : > { %2914 = vsyncadd (%p2747_p8), %s2168_s3, 4294966784  ;;  %s3664_s27 = sld [smem:[#allocation7_spill]]  ;;  %s3667_s24 = smov %s2921_s25 }
 0x6ed   : > { %s3665_s21 = sld [smem:[#allocation6_spill]] }
 0x6ee   : > { %s3666_s26 = sld [smem:[#allocation8_spill]] }
 0x6f2   : > { %p27_p9 = scmp.ge.s32.totalorder %s3664_s27, 4  }
 0x6f3   : > { %s3668_s25 = smov %s3665_s21 }
 0x6f4   :  { %29 = sbr.rel (!%p27_p9) target bundleno = 8 (0x8), region = 130 }
 0x6f9   :  { %2174 = vsyncpa [#allocation3], 1 }
 0x6fa   :  { %2176 = vsyncpa [#allocation3 + $0x1], 1 }

</bundles_post_ra>
